<compile_context>
chip_gen: v7x
topology: tpu7x:2x2x1
jax: 0.10.0
libtpu: 0.0.40
codegen_flags: <defaults>
</compile_context>

<pallas_src>
import jax
import jax.numpy as jnp
from jax.experimental import pallas as pl
from jax.experimental.pallas import tpu as pltpu


# f32 by default (safe on v5e, exact argmax parity with the reference).
# On v6e/v7x flip to jnp.bfloat16 for ~2x less weight DMA / MXU work.
COMPUTE_DTYPE = jnp.float32


# ----------------------------------------------------------------------------
# Fused forward kernel: conv1 -> conv2 -> fc1 -> fc2 -> argmax, all in VMEM.
# Activation layout: 2-D (n*hs, width), channels-last / lane-dense; batch is
# flattened into the M dimension of every matmul.
# ----------------------------------------------------------------------------
def _fused_qnet_kernel(x_ref, w1_ref, b1_ref, w2_ref, b2_ref,
                       w3_ref, b3_ref, w4_ref, b4_ref, o_ref):
    rows = x_ref.shape[0]          # n * hs
    k1 = w1_ref.shape[0]           # conv1 row taps after space-to-depth (2)
    k2 = w2_ref.shape[0]           # conv2 row taps (3)
    oh2 = w3_ref.shape[0]          # conv2 output rows per image (fc1 row blocks)
    na = w4_ref.shape[1]
    cd = COMPUTE_DTYPE

    x = x_ref[...].astype(cd)                                  # (rows, ws*cs)

    # --- conv1: 2 row taps, column taps pre-folded into banded (128, ow1*c1) ---
    acc1 = jnp.dot(x, w1_ref[0], preferred_element_type=jnp.float32)
    for a in range(1, k1):
        t = jnp.dot(x, w1_ref[a], preferred_element_type=jnp.float32)
        acc1 = acc1 + pltpu.roll(t, rows - a, 0)               # shift rows up by a
    a1 = jnp.maximum(acc1 + b1_ref[...], 0.0)                  # (rows, ow1*c1)

    # --- conv2: 3 row taps, banded (ow1*c1, ow2*c2) weights ---------------------
    a1c = a1.astype(cd)
    acc2 = jnp.dot(a1c, w2_ref[0], preferred_element_type=jnp.float32)
    for d in range(1, k2):
        t = jnp.dot(a1c, w2_ref[d], preferred_element_type=jnp.float32)
        acc2 = acc2 + pltpu.roll(t, rows - d, 0)
    a2 = jnp.maximum(acc2 + b2_ref[...], 0.0)                  # (rows, ow2*c2)

    # --- fc1: one unbatched dot per conv2 spatial row (no in-kernel reshape) ----
    a2c = a2.astype(cd)
    acc3 = jnp.dot(a2c, w3_ref[0], preferred_element_type=jnp.float32)
    for i in range(1, oh2):
        t = jnp.dot(a2c, w3_ref[i], preferred_element_type=jnp.float32)
        acc3 = acc3 + pltpu.roll(t, rows - i, 0)
    h = jnp.maximum(acc3 + b3_ref[...], 0.0)                   # (rows, hid)

    # --- fc2 + argmax fused, all f32; first index wins on ties (torch.argmax) ---
    q = jnp.dot(h, w4_ref[...], preferred_element_type=jnp.float32) + b4_ref[...]
    m = jnp.max(q, axis=-1, keepdims=True)
    idx = jax.lax.broadcasted_iota(jnp.int32, q.shape, dimension=1)
    o_ref[...] = jnp.min(jnp.where(q == m, idx, na), axis=-1, keepdims=True)


# ----------------------------------------------------------------------------
# One-time parameter re-layout: banded, column-tap-folded weights.
# ----------------------------------------------------------------------------
def prepare_inference_params(params, c, h, w):
    assert h % 2 == 0 and w % 2 == 0
    hs, ws = h // 2, w // 2
    cs = 4 * c                                   # space-to-depth channels per cell
    c1 = params["conv1_w"].shape[0]
    c2, _, k2, _ = params["conv2_w"].shape
    oh1, ow1 = hs - 1, ws - 1
    oh2, ow2 = oh1 - (k2 - 1), ow1 - (k2 - 1)
    hid = params["fc1_w"].shape[1]
    na = params["fc2_w"].shape[1]
    cd = COMPUTE_DTYPE

    # conv1 (c1, c, 4, 4): split into (row-tap a, col-tap bt) matrices of shape
    # (cs, c1), then fold the column tap into a banded (ws*cs, ow1*c1) weight
    # per row tap, so the kernel's conv1 operands start at lane offset 0.
    w1 = params["conv1_w"].reshape(c1, c, 2, 2, 2, 2)           # (o, ci, a, hp, bt, wp)
    w1 = w1.transpose(2, 4, 3, 5, 1, 0).reshape(2, 2, cs, c1)   # (a, bt, hp*2c+wp*c+ci, o)
    shift1 = jnp.stack([jnp.eye(ws, ow1, k=-bt, dtype=jnp.float32) for bt in range(2)])
    bw1 = jnp.einsum("abuo,bpj->apujo", w1, shift1).reshape(2, ws * cs, ow1 * c1)
    b1 = jnp.tile(params["conv1_b"], ow1).reshape(1, ow1 * c1)

    # conv2 (c2, c1, 3, 3): banded (ow1*c1, ow2*c2) weight per row tap di.
    w2 = params["conv2_w"].transpose(2, 3, 1, 0)                # (di, dj, ci, o)
    shift2 = jnp.stack([jnp.eye(ow1, ow2, k=-dj, dtype=jnp.float32) for dj in range(k2)])
    bw2 = jnp.einsum("dDio,Dpj->dpijo", w2, shift2).reshape(k2, ow1 * c1, ow2 * c2)
    b2 = jnp.tile(params["conv2_b"], ow2).reshape(1, ow2 * c2)

    # fc1 rows follow the torch NCHW flatten (oc, i, j); regroup to per-spatial-row
    # (i) x channels-last (j*c2+oc) blocks so fc1 is oh2 unbatched dots.
    w3 = params["fc1_w"].reshape(c2, oh2, ow2, hid).transpose(1, 2, 0, 3)
    w3 = w3.reshape(oh2, ow2 * c2, hid)
    b3 = params["fc1_b"].reshape(1, hid)

    return dict(bw1=bw1.astype(cd), b1=b1, bw2=bw2.astype(cd), b2=b2,
                w3=w3.astype(cd), b3=b3,
                w4=params["fc2_w"], b4=params["fc2_b"].reshape(1, na))


def _space_to_depth_2d(obs):
    """NCHW obs -> (N*H/2, (W/2)*4*C): 2x2-cell packed, channels-last, batch-flat."""
    n, c, h, w = obs.shape
    x = obs.transpose(0, 2, 3, 1)                         # NHWC
    x = x.reshape(n, h // 2, 2, w // 2, 2, c)             # (n, ho, hp, wo, wp, c)
    x = x.transpose(0, 1, 3, 2, 4, 5)                     # (n, ho, wo, hp, wp, c)
    return x.reshape(n * (h // 2), (w // 2) * 4 * c)
    # TODO(synk): at production batch, keep obs channels-last upstream or fold the
    # 2x2 cell packing into bw1 so this extra XLA HBM pass over obs disappears.


def _full_block(shape):
    nd = len(shape)
    return pl.BlockSpec(shape, lambda i, nd=nd: (0,) * nd)


@jax.jit
def q_policy_forward(iparams, obs):
    """QPolicyWrapper.forward: argmax_a Q(obs, a), keepdim=True -> (N, 1) int32."""
    n, c, h, w = obs.shape
    hs = h // 2
    x2 = _space_to_depth_2d(obs)                          # (n*hs, (w//2)*4*c)

    operands = (x2, iparams["bw1"], iparams["b1"], iparams["bw2"], iparams["b2"],
                iparams["w3"], iparams["b3"], iparams["w4"], iparams["b4"])
    out_full = pl.pallas_call(
        _fused_qnet_kernel,
        out_shape=jax.ShapeDtypeStruct((n * hs, 1), jnp.int32),
        grid=(1,),
        in_specs=[_full_block(op.shape) for op in operands],
        out_specs=pl.BlockSpec((n * hs, 1), lambda i: (0, 0)),
        compiler_params=pltpu.CompilerParams(dimension_semantics=("arbitrary",)),
    )(*operands)
    # TODO(synk): at larger batch, tile the grid over the row dimension with
    # "parallel" semantics (constant index_maps on the weight BlockSpecs so they
    # stay VMEM-resident) to engage both v7x TensorCores; at N=2 one program is
    # already launch/DMA-bound.

    # Row b*hs holds batch item b's greedy action; the other rows are junk rows
    # that let every matmul run with batch flattened into M (no in-kernel reshapes).
    return out_full[::hs]


# ----------------------------------------------------------------------------
# Q-network parameter init (torch-default-style, deterministic)
# ----------------------------------------------------------------------------
def init_params(key, c, h, w, num_actions):
    def uinit(k, shape, fan_in):
        bound = float(fan_in) ** -0.5
        return jax.random.uniform(k, shape, jnp.float32, -bound, bound)

    ks = jax.random.split(key, 8)
    conv1_w = uinit(ks[0], (16, c, 4, 4), c * 16)
    conv1_b = uinit(ks[1], (16,), c * 16)
    oh1, ow1 = (h - 4) // 2 + 1, (w - 4) // 2 + 1
    conv2_w = uinit(ks[2], (32, 16, 3, 3), 16 * 9)
    conv2_b = uinit(ks[3], (32,), 16 * 9)
    oh2, ow2 = oh1 - 3 + 1, ow1 - 3 + 1
    flat = 32 * oh2 * ow2
    fc1_w = uinit(ks[4], (flat, 64), flat)       # stored (K, N)
    fc1_b = uinit(ks[5], (64,), flat)
    fc2_w = uinit(ks[6], (64, num_actions), 64)
    fc2_b = uinit(ks[7], (num_actions,), 64)
    return dict(conv1_w=conv1_w, conv1_b=conv1_b,
                conv2_w=conv2_w, conv2_b=conv2_b,
                fc1_w=fc1_w, fc1_b=fc1_b,
                fc2_w=fc2_w, fc2_b=fc2_b)


# ----------------------------------------------------------------------------
# Pure-JAX reference (correctness check only; torch NCHW semantics)
# ----------------------------------------------------------------------------
def reference_forward(params, obs):
    hi = jax.lax.Precision.HIGHEST

    def conv(x, wgt, b, stride):
        y = jax.lax.conv_general_dilated(
            x, wgt, window_strides=(stride, stride), padding="VALID",
            dimension_numbers=("NCHW", "OIHW", "NCHW"), precision=hi)
        return jnp.maximum(y + b[None, :, None, None], 0.0)

    n = obs.shape[0]
    x = conv(obs, params["conv1_w"], params["conv1_b"], 2)
    x = conv(x, params["conv2_w"], params["conv2_b"], 1)
    x = x.reshape(n, -1)                                   # torch flatten of NCHW
    x = jnp.maximum(jnp.dot(x, params["fc1_w"], precision=hi) + params["fc1_b"], 0.0)
    q = jnp.dot(x, params["fc2_w"], precision=hi) + params["fc2_b"]
    return jnp.argmax(q, axis=-1, keepdims=True).astype(jnp.int32)


# ----------------------------------------------------------------------------
if __name__ == "__main__":
    key = jax.random.PRNGKey(0)
    N, C, H, W = 2, 4, 16, 16
    NUM_ACTIONS = 6

    key, kx = jax.random.split(key)
    obs = jax.random.normal(kx, (N, C, H, W), dtype=jnp.float32)
    params = init_params(key, C, H, W, NUM_ACTIONS)
    iparams = prepare_inference_params(params, C, H, W)

    actions = jax.block_until_ready(q_policy_forward(iparams, obs))

    assert actions.shape == (N, 1) and actions.dtype == jnp.int32
    ref = reference_forward(params, obs)
    assert bool(jnp.all(actions == ref)), (actions, ref)

    print("KERNEL_OK")
</pallas_src>

<mosaic_0001>
module attributes {stable_mosaic.version = 11 : i64} {
  func.func @_fused_qnet_kernel(%arg0: i32, %arg1: memref<16x128xf32, #tpu.memory_space<vmem>>, %arg2: memref<2x128x112xf32, #tpu.memory_space<vmem>>, %arg3: memref<1x112xf32, #tpu.memory_space<vmem>>, %arg4: memref<3x112x160xf32, #tpu.memory_space<vmem>>, %arg5: memref<1x160xf32, #tpu.memory_space<vmem>>, %arg6: memref<5x160x64xf32, #tpu.memory_space<vmem>>, %arg7: memref<1x64xf32, #tpu.memory_space<vmem>>, %arg8: memref<64x6xf32, #tpu.memory_space<vmem>>, %arg9: memref<1x6xf32, #tpu.memory_space<vmem>>, %arg10: memref<16x1xi32, #tpu.memory_space<vmem>>) attributes {dimension_semantics = [#tpu.dimension_semantics<arbitrary>], iteration_bounds = array<i64: 1>, scalar_prefetch = 0 : i64, scratch_operands = 0 : i64, tpu.core_type = #tpu.core_type<tc>, window_params = [{pipeline_mode = #tpu.pipeline_mode<synchronous>, transform_indices = @transform_0, window_bounds = array<i64: 16, 128>}, {pipeline_mode = #tpu.pipeline_mode<synchronous>, transform_indices = @transform_1, window_bounds = array<i64: 2, 128, 112>}, {pipeline_mode = #tpu.pipeline_mode<synchronous>, transform_indices = @transform_2, window_bounds = array<i64: 1, 112>}, {pipeline_mode = #tpu.pipeline_mode<synchronous>, transform_indices = @transform_3, window_bounds = array<i64: 3, 112, 160>}, {pipeline_mode = #tpu.pipeline_mode<synchronous>, transform_indices = @transform_4, window_bounds = array<i64: 1, 160>}, {pipeline_mode = #tpu.pipeline_mode<synchronous>, transform_indices = @transform_5, window_bounds = array<i64: 5, 160, 64>}, {pipeline_mode = #tpu.pipeline_mode<synchronous>, transform_indices = @transform_6, window_bounds = array<i64: 1, 64>}, {pipeline_mode = #tpu.pipeline_mode<synchronous>, transform_indices = @transform_7, window_bounds = array<i64: 64, 6>}, {pipeline_mode = #tpu.pipeline_mode<synchronous>, transform_indices = @transform_8, window_bounds = array<i64: 1, 6>}, {pipeline_mode = #tpu.pipeline_mode<synchronous>, transform_indices = @transform_9, window_bounds = array<i64: 16, 1>}]} {
    %c0 = arith.constant 0 : index
    %c0_0 = arith.constant 0 : index
    %0 = vector.load %arg1[%c0, %c0_0] : memref<16x128xf32, #tpu.memory_space<vmem>>, vector<16x128xf32>
    %c0_1 = arith.constant 0 : index
    %c0_2 = arith.constant 0 : index
    %c0_3 = arith.constant 0 : index
    %1 = vector.load %arg2[%c0_1, %c0_2, %c0_3] : memref<2x128x112xf32, #tpu.memory_space<vmem>>, vector<1x128x112xf32>
    %2 = vector.shape_cast %1 : vector<1x128x112xf32> to vector<128x112xf32>
    %cst = arith.constant dense<0.000000e+00> : vector<16x112xf32>
    %3 = tpu.matmul %0, %2, %cst {dimension_numbers = #tpu.dot_dimension_numbers<[1], [0], [0], [1], [0, 0, 1, 1], [], []>} : vector<16x128xf32>, vector<128x112xf32>, vector<16x112xf32> -> vector<16x112xf32>
    %c1 = arith.constant 1 : index
    %c0_4 = arith.constant 0 : index
    %c0_5 = arith.constant 0 : index
    %4 = vector.load %arg2[%c1, %c0_4, %c0_5] : memref<2x128x112xf32, #tpu.memory_space<vmem>>, vector<1x128x112xf32>
    %5 = vector.shape_cast %4 : vector<1x128x112xf32> to vector<128x112xf32>
    %cst_6 = arith.constant dense<0.000000e+00> : vector<16x112xf32>
    %6 = tpu.matmul %0, %5, %cst_6 {dimension_numbers = #tpu.dot_dimension_numbers<[1], [0], [0], [1], [0, 0, 1, 1], [], []>} : vector<16x128xf32>, vector<128x112xf32>, vector<16x112xf32> -> vector<16x112xf32>
    %c15_i32 = arith.constant 15 : i32
    %7 = tpu.dynamic_rotate %6 by %c15_i32 dim 0 : vector<16x112xf32>, i32 -> vector<16x112xf32>
    %8 = arith.addf %3, %7 : vector<16x112xf32>
    %c0_7 = arith.constant 0 : index
    %c0_8 = arith.constant 0 : index
    %9 = vector.load %arg3[%c0_7, %c0_8] : memref<1x112xf32, #tpu.memory_space<vmem>>, vector<1x112xf32>
    %10 = vector.broadcast %9 : vector<1x112xf32> to vector<16x112xf32>
    %11 = arith.addf %8, %10 : vector<16x112xf32>
    %cst_9 = arith.constant 0.000000e+00 : f32
    %12 = vector.broadcast %cst_9 : f32 to vector<16x112xf32>
    %13 = arith.maximumf %11, %12 : vector<16x112xf32>
    %c0_10 = arith.constant 0 : index
    %c0_11 = arith.constant 0 : index
    %c0_12 = arith.constant 0 : index
    %14 = vector.load %arg4[%c0_10, %c0_11, %c0_12] : memref<3x112x160xf32, #tpu.memory_space<vmem>>, vector<1x112x160xf32>
    %15 = vector.shape_cast %14 : vector<1x112x160xf32> to vector<112x160xf32>
    %cst_13 = arith.constant dense<0.000000e+00> : vector<16x160xf32>
    %16 = tpu.matmul %13, %15, %cst_13 {dimension_numbers = #tpu.dot_dimension_numbers<[1], [0], [0], [1], [0, 0, 1, 1], [], []>} : vector<16x112xf32>, vector<112x160xf32>, vector<16x160xf32> -> vector<16x160xf32>
    %c1_14 = arith.constant 1 : index
    %c0_15 = arith.constant 0 : index
    %c0_16 = arith.constant 0 : index
    %17 = vector.load %arg4[%c1_14, %c0_15, %c0_16] : memref<3x112x160xf32, #tpu.memory_space<vmem>>, vector<1x112x160xf32>
    %18 = vector.shape_cast %17 : vector<1x112x160xf32> to vector<112x160xf32>
    %cst_17 = arith.constant dense<0.000000e+00> : vector<16x160xf32>
    %19 = tpu.matmul %13, %18, %cst_17 {dimension_numbers = #tpu.dot_dimension_numbers<[1], [0], [0], [1], [0, 0, 1, 1], [], []>} : vector<16x112xf32>, vector<112x160xf32>, vector<16x160xf32> -> vector<16x160xf32>
    %c15_i32_18 = arith.constant 15 : i32
    %20 = tpu.dynamic_rotate %19 by %c15_i32_18 dim 0 : vector<16x160xf32>, i32 -> vector<16x160xf32>
    %21 = arith.addf %16, %20 : vector<16x160xf32>
    %c2 = arith.constant 2 : index
    %c0_19 = arith.constant 0 : index
    %c0_20 = arith.constant 0 : index
    %22 = vector.load %arg4[%c2, %c0_19, %c0_20] : memref<3x112x160xf32, #tpu.memory_space<vmem>>, vector<1x112x160xf32>
    %23 = vector.shape_cast %22 : vector<1x112x160xf32> to vector<112x160xf32>
    %cst_21 = arith.constant dense<0.000000e+00> : vector<16x160xf32>
    %24 = tpu.matmul %13, %23, %cst_21 {dimension_numbers = #tpu.dot_dimension_numbers<[1], [0], [0], [1], [0, 0, 1, 1], [], []>} : vector<16x112xf32>, vector<112x160xf32>, vector<16x160xf32> -> vector<16x160xf32>
    %c14_i32 = arith.constant 14 : i32
    %25 = tpu.dynamic_rotate %24 by %c14_i32 dim 0 : vector<16x160xf32>, i32 -> vector<16x160xf32>
    %26 = arith.addf %21, %25 : vector<16x160xf32>
    %c0_22 = arith.constant 0 : index
    %c0_23 = arith.constant 0 : index
    %27 = vector.load %arg5[%c0_22, %c0_23] : memref<1x160xf32, #tpu.memory_space<vmem>>, vector<1x160xf32>
    %28 = vector.broadcast %27 : vector<1x160xf32> to vector<16x160xf32>
    %29 = arith.addf %26, %28 : vector<16x160xf32>
    %cst_24 = arith.constant 0.000000e+00 : f32
    %30 = vector.broadcast %cst_24 : f32 to vector<16x160xf32>
    %31 = arith.maximumf %29, %30 : vector<16x160xf32>
    %c0_25 = arith.constant 0 : index
    %c0_26 = arith.constant 0 : index
    %c0_27 = arith.constant 0 : index
    %32 = vector.load %arg6[%c0_25, %c0_26, %c0_27] : memref<5x160x64xf32, #tpu.memory_space<vmem>>, vector<1x160x64xf32>
    %33 = vector.shape_cast %32 : vector<1x160x64xf32> to vector<160x64xf32>
    %cst_28 = arith.constant dense<0.000000e+00> : vector<16x64xf32>
    %34 = tpu.matmul %31, %33, %cst_28 {dimension_numbers = #tpu.dot_dimension_numbers<[1], [0], [0], [1], [0, 0, 1, 1], [], []>} : vector<16x160xf32>, vector<160x64xf32>, vector<16x64xf32> -> vector<16x64xf32>
    %c1_29 = arith.constant 1 : index
    %c0_30 = arith.constant 0 : index
    %c0_31 = arith.constant 0 : index
    %35 = vector.load %arg6[%c1_29, %c0_30, %c0_31] : memref<5x160x64xf32, #tpu.memory_space<vmem>>, vector<1x160x64xf32>
    %36 = vector.shape_cast %35 : vector<1x160x64xf32> to vector<160x64xf32>
    %cst_32 = arith.constant dense<0.000000e+00> : vector<16x64xf32>
    %37 = tpu.matmul %31, %36, %cst_32 {dimension_numbers = #tpu.dot_dimension_numbers<[1], [0], [0], [1], [0, 0, 1, 1], [], []>} : vector<16x160xf32>, vector<160x64xf32>, vector<16x64xf32> -> vector<16x64xf32>
    %c15_i32_33 = arith.constant 15 : i32
    %38 = tpu.dynamic_rotate %37 by %c15_i32_33 dim 0 : vector<16x64xf32>, i32 -> vector<16x64xf32>
    %39 = arith.addf %34, %38 : vector<16x64xf32>
    %c2_34 = arith.constant 2 : index
    %c0_35 = arith.constant 0 : index
    %c0_36 = arith.constant 0 : index
    %40 = vector.load %arg6[%c2_34, %c0_35, %c0_36] : memref<5x160x64xf32, #tpu.memory_space<vmem>>, vector<1x160x64xf32>
    %41 = vector.shape_cast %40 : vector<1x160x64xf32> to vector<160x64xf32>
    %cst_37 = arith.constant dense<0.000000e+00> : vector<16x64xf32>
    %42 = tpu.matmul %31, %41, %cst_37 {dimension_numbers = #tpu.dot_dimension_numbers<[1], [0], [0], [1], [0, 0, 1, 1], [], []>} : vector<16x160xf32>, vector<160x64xf32>, vector<16x64xf32> -> vector<16x64xf32>
    %c14_i32_38 = arith.constant 14 : i32
    %43 = tpu.dynamic_rotate %42 by %c14_i32_38 dim 0 : vector<16x64xf32>, i32 -> vector<16x64xf32>
    %44 = arith.addf %39, %43 : vector<16x64xf32>
    %c3 = arith.constant 3 : index
    %c0_39 = arith.constant 0 : index
    %c0_40 = arith.constant 0 : index
    %45 = vector.load %arg6[%c3, %c0_39, %c0_40] : memref<5x160x64xf32, #tpu.memory_space<vmem>>, vector<1x160x64xf32>
    %46 = vector.shape_cast %45 : vector<1x160x64xf32> to vector<160x64xf32>
    %cst_41 = arith.constant dense<0.000000e+00> : vector<16x64xf32>
    %47 = tpu.matmul %31, %46, %cst_41 {dimension_numbers = #tpu.dot_dimension_numbers<[1], [0], [0], [1], [0, 0, 1, 1], [], []>} : vector<16x160xf32>, vector<160x64xf32>, vector<16x64xf32> -> vector<16x64xf32>
    %c13_i32 = arith.constant 13 : i32
    %48 = tpu.dynamic_rotate %47 by %c13_i32 dim 0 : vector<16x64xf32>, i32 -> vector<16x64xf32>
    %49 = arith.addf %44, %48 : vector<16x64xf32>
    %c4 = arith.constant 4 : index
    %c0_42 = arith.constant 0 : index
    %c0_43 = arith.constant 0 : index
    %50 = vector.load %arg6[%c4, %c0_42, %c0_43] : memref<5x160x64xf32, #tpu.memory_space<vmem>>, vector<1x160x64xf32>
    %51 = vector.shape_cast %50 : vector<1x160x64xf32> to vector<160x64xf32>
    %cst_44 = arith.constant dense<0.000000e+00> : vector<16x64xf32>
    %52 = tpu.matmul %31, %51, %cst_44 {dimension_numbers = #tpu.dot_dimension_numbers<[1], [0], [0], [1], [0, 0, 1, 1], [], []>} : vector<16x160xf32>, vector<160x64xf32>, vector<16x64xf32> -> vector<16x64xf32>
    %c12_i32 = arith.constant 12 : i32
    %53 = tpu.dynamic_rotate %52 by %c12_i32 dim 0 : vector<16x64xf32>, i32 -> vector<16x64xf32>
    %54 = arith.addf %49, %53 : vector<16x64xf32>
    %c0_45 = arith.constant 0 : index
    %c0_46 = arith.constant 0 : index
    %55 = vector.load %arg7[%c0_45, %c0_46] : memref<1x64xf32, #tpu.memory_space<vmem>>, vector<1x64xf32>
    %56 = vector.broadcast %55 : vector<1x64xf32> to vector<16x64xf32>
    %57 = arith.addf %54, %56 : vector<16x64xf32>
    %cst_47 = arith.constant 0.000000e+00 : f32
    %58 = vector.broadcast %cst_47 : f32 to vector<16x64xf32>
    %59 = arith.maximumf %57, %58 : vector<16x64xf32>
    %c0_48 = arith.constant 0 : index
    %c0_49 = arith.constant 0 : index
    %60 = vector.load %arg8[%c0_48, %c0_49] : memref<64x6xf32, #tpu.memory_space<vmem>>, vector<64x6xf32>
    %cst_50 = arith.constant dense<0.000000e+00> : vector<16x6xf32>
    %61 = tpu.matmul %59, %60, %cst_50 {dimension_numbers = #tpu.dot_dimension_numbers<[1], [0], [0], [1], [0, 0, 1, 1], [], []>} : vector<16x64xf32>, vector<64x6xf32>, vector<16x6xf32> -> vector<16x6xf32>
    %c0_51 = arith.constant 0 : index
    %c0_52 = arith.constant 0 : index
    %62 = vector.load %arg9[%c0_51, %c0_52] : memref<1x6xf32, #tpu.memory_space<vmem>>, vector<1x6xf32>
    %63 = vector.broadcast %62 : vector<1x6xf32> to vector<16x6xf32>
    %64 = arith.addf %61, %63 : vector<16x6xf32>
    %cst_53 = arith.constant dense<0xFF800000> : vector<16xf32>
    %65 = vector.multi_reduction <maximumf>, %64, %cst_53 [1] : vector<16x6xf32> to vector<16xf32>
    %66 = vector.shape_cast %65 : vector<16xf32> to vector<16x1xf32>
    %67 = tpu.iota {dimensions = array<i32: 1>} : vector<16x6xi32>
    %68 = vector.broadcast %66 : vector<16x1xf32> to vector<16x6xf32>
    %69 = arith.cmpf oeq, %64, %68 : vector<16x6xf32>
    %c6_i32 = arith.constant 6 : i32
    %70 = vector.broadcast %c6_i32 : i32 to vector<16x6xi32>
    %71 = arith.select %69, %67, %70 : vector<16x6xi1>, vector<16x6xi32>
    %cst_54 = arith.constant dense<2147483647> : vector<16xi32>
    %72 = vector.multi_reduction <minsi>, %71, %cst_54 [1] : vector<16x6xi32> to vector<16xi32>
    %73 = vector.shape_cast %72 : vector<16xi32> to vector<16x1xi32>
    %c0_55 = arith.constant 0 : index
    %c0_56 = arith.constant 0 : index
    %74 = vector.load %arg10[%c0_55, %c0_56] : memref<16x1xi32, #tpu.memory_space<vmem>>, vector<16x1xi32>
    tpu.vector_store %arg10[%c0_55, %c0_56], %73 {strides = array<i32>} : memref<16x1xi32, #tpu.memory_space<vmem>>, vector<16x1xi32>,
    return
  }
  func.func @transform_0(%arg0: i32) -> (i32, i32) {
    %c0_i32 = arith.constant 0 : i32
    %c0_i32_0 = arith.constant 0 : i32
    %c0_i32_1 = arith.constant 0 : i32
    return %c0_i32, %c0_i32_0 : i32, i32
  }
  func.func @transform_1(%arg0: i32) -> (i32, i32, i32) {
    %c0_i32 = arith.constant 0 : i32
    %c0_i32_0 = arith.constant 0 : i32
    %c0_i32_1 = arith.constant 0 : i32
    %c0_i32_2 = arith.constant 0 : i32
    return %c0_i32, %c0_i32_0, %c0_i32_1 : i32, i32, i32
  }
  func.func @transform_2(%arg0: i32) -> (i32, i32) {
    %c0_i32 = arith.constant 0 : i32
    %c0_i32_0 = arith.constant 0 : i32
    %c0_i32_1 = arith.constant 0 : i32
    return %c0_i32, %c0_i32_0 : i32, i32
  }
  func.func @transform_3(%arg0: i32) -> (i32, i32, i32) {
    %c0_i32 = arith.constant 0 : i32
    %c0_i32_0 = arith.constant 0 : i32
    %c0_i32_1 = arith.constant 0 : i32
    %c0_i32_2 = arith.constant 0 : i32
    return %c0_i32, %c0_i32_0, %c0_i32_1 : i32, i32, i32
  }
  func.func @transform_4(%arg0: i32) -> (i32, i32) {
    %c0_i32 = arith.constant 0 : i32
    %c0_i32_0 = arith.constant 0 : i32
    %c0_i32_1 = arith.constant 0 : i32
    return %c0_i32, %c0_i32_0 : i32, i32
  }
  func.func @transform_5(%arg0: i32) -> (i32, i32, i32) {
    %c0_i32 = arith.constant 0 : i32
    %c0_i32_0 = arith.constant 0 : i32
    %c0_i32_1 = arith.constant 0 : i32
    %c0_i32_2 = arith.constant 0 : i32
    return %c0_i32, %c0_i32_0, %c0_i32_1 : i32, i32, i32
  }
  func.func @transform_6(%arg0: i32) -> (i32, i32) {
    %c0_i32 = arith.constant 0 : i32
    %c0_i32_0 = arith.constant 0 : i32
    %c0_i32_1 = arith.constant 0 : i32
    return %c0_i32, %c0_i32_0 : i32, i32
  }
  func.func @transform_7(%arg0: i32) -> (i32, i32) {
    %c0_i32 = arith.constant 0 : i32
    %c0_i32_0 = arith.constant 0 : i32
    %c0_i32_1 = arith.constant 0 : i32
    return %c0_i32, %c0_i32_0 : i32, i32
  }
  func.func @transform_8(%arg0: i32) -> (i32, i32) {
    %c0_i32 = arith.constant 0 : i32
    %c0_i32_0 = arith.constant 0 : i32
    %c0_i32_1 = arith.constant 0 : i32
    return %c0_i32, %c0_i32_0 : i32, i32
  }
  func.func @transform_9(%arg0: i32) -> (i32, i32) {
    %c0_i32 = arith.constant 0 : i32
    %c0_i32_0 = arith.constant 0 : i32
    %c0_i32_1 = arith.constant 0 : i32
    return %c0_i32, %c0_i32_0 : i32, i32
  }
}

</mosaic_0001>

<bundles_post_ra>
// kernel: q_policy_forward.1
= control target key start
LH: loop header
LB: loop body
LE: loop exit
PB: predicated region body
PF: predicated region fallthrough
CT: control target
= control target key end

     0   :  { %vm292_vm1 = vcmask 916480   ;;  %vm641_vm3 = vcmask 261120   ;;  %vm1136_vm6 = vcmask 523264   ;;  %vm1218_vm7 = vcmask 48128   ;;  %s2782_s1 = inlined_call_operand.vmem [shape: f32[2,128,112], index: 1, kind: input, shape index: {}]   ;;  %s2783_s0 = inlined_call_operand.vmem [shape: f32[16,128], index: 0, kind: input, shape index: {}]   ;;  %s2784_s3 = inlined_call_operand.vmem [shape: f32[3,112,160], index: 3, kind: input, shape index: {}]   ;;  %s2785_s2 = inlined_call_operand.vmem [shape: f32[1,112], index: 2, kind: input, shape index: {}]   ;;  %s2786_s5 = inlined_call_operand.vmem [shape: f32[5,160,64], index: 5, kind: input, shape index: {}]   ;;  %s2787_s4 = inlined_call_operand.vmem [shape: f32[1,160], index: 4, kind: input, shape index: {}]   ;;  %s2788_s7 = inlined_call_operand.vmem [shape: f32[64,6], index: 7, kind: input, shape index: {}]   ;;  %s2789_s6 = inlined_call_operand.vmem [shape: f32[1,64], index: 6, kind: input, shape index: {}]   ;;  %s2790_s8 = inlined_call_operand.vmem [shape: f32[1,6], index: 8, kind: input, shape index: {}]   ;;  %s2791_s9 = inlined_call_operand.vmem [shape: s32[16,1], index: 9, kind: output, shape index: {}]  }
   0x1   :  { %v1268_v0 = vld [vmem:[%s2782_s1 + $0x80] sm:$0xff]  ;;  %v1269_v1 = vld [vmem:[%s2782_s1 + $0x88] sm:$0xff]  ;;  %v1270_v5 = vld [vmem:[%s2782_s1 + $0x90] sm:$0xff]  ;;  %vm1261_vm12 = vcmask 7168  }
   0x2   :  { %v34_v2 = vld [vmem:[%s2782_s1] sm:$0xff]  ;;  %v1576_v3 = vpack.c.bf16 %v1269_v1, %v1268_v0  ;;  %v35_v4 = vld [vmem:[%s2782_s1 + $0x8] sm:$0xff]  ;;  %v1271_v6 = vld [vmem:[%s2782_s1 + $0x98] sm:$0xff] }
   0x3   :  { %v1608_v7 = vpack.c.bf16 %v35_v4, %v34_v2  ;;  %v1580_v8 = vpack.c.bf16 %v1271_v6, %v1270_v5  ;;  %v36_v9 = vld [vmem:[%s2782_s1 + $0x10] sm:$0xff]  ;;  %v37_v10 = vld [vmem:[%s2782_s1 + $0x18] sm:$0xff]  ;;  %v1272_v11 = vld [vmem:[%s2782_s1 + $0xa0] sm:$0xff] }
   0x4   :  { %1577 = vmatprep.subr.bf16.mxu0 %v1576_v3  ;;  %v1612_v12 = vpack.c.bf16 %v37_v10, %v36_v9  ;;  %v1273_v13 = vld [vmem:[%s2782_s1 + $0xa8] sm:$0xff]  ;;  %v38_v14 = vld [vmem:[%s2782_s1 + $0x20] sm:$0xff]  ;;  %v1274_v18 = vld [vmem:[%s2782_s1 + $0xb0] sm:$0xff] }
   0x5   :  { %v39_v15 = vld [vmem:[%s2782_s1 + $0x28] sm:$0xff]  ;;  %1579 = vmatpush3.bf16.msra.mxu0 %v1576_v3  ;;  %1609 = vmatprep.subr.bf16.mxu1 %v1608_v7  ;;  %v1584_v16 = vpack.c.bf16 %v1273_v13, %v1272_v11  ;;  %v1275_v19 = vld [vmem:[%s2782_s1 + $0xb8] sm:$0xff]  ;;  %v40_v20 = vld [vmem:[%s2782_s1 + $0x30] sm:$0xff] }
   0x6   :  { %1611 = vmatpush3.bf16.msra.mxu1 %v1608_v7  ;;  %1581 = vmatprep.subr.bf16.mxu0 %v1580_v8  ;;  %v1616_v17 = vpack.c.bf16 %v39_v15, %v38_v14  ;;  %v41_v21 = vld [vmem:[%s2782_s1 + $0x38] sm:$0xff]  ;;  %v1588_v22 = vpack.c.bf16 %v1275_v19, %v1274_v18  ;;  %v1276_v24 = vld [vmem:[%s2782_s1 + $0xc0] sm:$0xff]  ;;  %v1277_v25 = vld [vmem:[%s2782_s1 + $0xc8] sm:$0xff] }
   0x7   :  { %1613 = vmatprep.subr.bf16.mxu1 %v1612_v12  ;;  %v1620_v23 = vpack.c.bf16 %v41_v21, %v40_v20  ;;  %v32_v26 = vld [vmem:[%s2783_s0] sm:$0xff]  ;;  %v43_v28 = vld [vmem:[%s2782_s1 + $0x48] sm:$0xff]  ;;  %v1592_v29 = vpack.c.bf16 %v1277_v25, %v1276_v24  ;;  %v1278_v31 = vld [vmem:[%s2782_s1 + $0xd0] sm:$0xff] }
   0x8   :  { %v42_v27 = vld [vmem:[%s2782_s1 + $0x40] sm:$0xff]  ;;  %1519 = vmatprep.mubr.f32.mxu0 %v32_v26  ;;  %1554 = vmatprep.mubr.f32.mxu1 %v32_v26  ;;  %v1279_v32 = vld [vmem:[%s2782_s1 + $0xd8] sm:$0xff]  ;;  %v44_v33 = vld [vmem:[%s2782_s1 + $0x50] sm:$0xff] }
   0x9   :  { %1583 = vmatpush3.bf16.msra.mxu0 %v1580_v8  ;;  %v1624_v30 = vpack.c.bf16 %v43_v28, %v42_v27  ;;  %v45_v34 = vld [vmem:[%s2782_s1 + $0x58] sm:$0xff]  ;;  %v1596_v35 = vpack.c.bf16 %v1279_v32, %v1278_v31  ;;  %v1280_v37 = vld [vmem:[%s2782_s1 + $0xe0] sm:$0xff]  ;;  %v1281_v38 = vld [vmem:[%s2782_s1 + $0xe8] sm:$0xff] }
   0xa   :  { %1615 = vmatpush3.bf16.msra.mxu1 %v1612_v12  ;;  %1585 = vmatprep.subr.bf16.mxu0 %v1584_v16  ;;  %v1628_v36 = vpack.c.bf16 %v45_v34, %v44_v33  ;;  %v46_v39 = vld [vmem:[%s2782_s1 + $0x60] sm:$0xff]  ;;  %v47_v40 = vld [vmem:[%s2782_s1 + $0x68] sm:$0xff]  ;;  %v1600_v41 = vpack.c.bf16 %v1281_v38, %v1280_v37  ;;  %v1282_v43 = vld [vmem:[%s2782_s1 + $0xf0] sm:$0xff] }
   0xb   :  { %1617 = vmatprep.subr.bf16.mxu1 %v1616_v17  ;;  %v1632_v42 = vpack.c.bf16 %v47_v40, %v46_v39  ;;  %v1283_v44 = vld [vmem:[%s2782_s1 + $0xf8] sm:$0xff]  ;;  %v48_v45 = vld [vmem:[%s2782_s1 + $0x70] sm:$0xff]  ;;  %v1286_v49 = vld [vmem:[%s2784_s3 + $0xe8] sm:$0xff] }
   0xc   :  { %v49_v46 = vld [vmem:[%s2782_s1 + $0x78] sm:$0xff]  ;;  %v1604_v47 = vpack.c.bf16 %v1283_v44, %v1282_v43  ;;  %v236_v51 = vld [vmem:[%s2784_s3 + $0x8] sm:$0xff]  ;;  %v1285_v54 = vld [vmem:[%s2784_s3 + $0xe0] sm:$0xff] }
   0xd   :  { %1587 = vmatpush3.bf16.msra.mxu0 %v1584_v16  ;;  %v1636_v48 = vpack.c.bf16 %v49_v46, %v48_v45  ;;  %v1288_v50 = vld [vmem:[%s2784_s3 + $0xf8] sm:$0xff]  ;;  %v1287_v55 = vld [vmem:[%s2784_s3 + $0xf0] sm:$0xff]  ;;  %v235_v56 = vld [vmem:[%s2784_s3] sm:$0xff] }
   0xe   :  { %1619 = vmatpush3.bf16.msra.mxu1 %v1616_v17  ;;  %1589 = vmatprep.subr.bf16.mxu0 %v1588_v22  ;;  %v238_v52 = vld [vmem:[%s2784_s3 + $0x18] sm:$0xff]  ;;  %v1640_v53 = vpack.c.bf16 %v1288_v50, %v1286_v49  ;;  %v237_v58 = vld [vmem:[%s2784_s3 + $0x10] sm:$0xff]  ;;  %v1290_v59 = vld [vmem:[%s2784_s3 + $0x108] sm:$0xff]  ;;  %v1642_v0 = vpack.c.bf16 %v1287_v55, %v1285_v54 }
   0xf   :  { %1621 = vmatprep.subr.bf16.mxu1 %v1620_v23  ;;  %v1668_v57 = vpack.c.bf16 %v238_v52, %v236_v51  ;;  %v1292_v60 = vld [vmem:[%s2784_s3 + $0x118] sm:$0xff]  ;;  %v240_v61 = vld [vmem:[%s2784_s3 + $0x28] sm:$0xff]  ;;  %v1670_v1 = vpack.c.bf16 %v237_v58, %v235_v56  ;;  %v1289_v3 = vld [vmem:[%s2784_s3 + $0x100] sm:$0xff] }
  0x10   :  { %v242_v62 = vld [vmem:[%s2784_s3 + $0x38] sm:$0xff]  ;;  %v33_v63 = vld [vmem:[%s2783_s0 + $0x8] sm:$0xff]  ;;  %v1644_v2 = vpack.c.bf16 %v1292_v60, %v1290_v59  ;;  %v1291_v4 = vld [vmem:[%s2784_s3 + $0x110] sm:$0xff] }
  0x11   :  { %1591 = vmatpush3.bf16.msra.mxu0 %v1588_v22  ;;  %v239_v5 = vld [vmem:[%s2784_s3 + $0x20] sm:$0xff]  ;;  %v1672_v6 = vpack.c.bf16 %v242_v62, %v240_v61  ;;  %v241_v7 = vld [vmem:[%s2784_s3 + $0x30] sm:$0xff]  ;;  %v1294_v8 = vld [vmem:[%s2784_s3 + $0x128] sm:$0xff]  ;;  %v1646_v12 = vpack.c.bf16 %v1291_v4, %v1289_v3 }
  0x12   :  { %1623 = vmatpush3.bf16.msra.mxu1 %v1620_v23  ;;  %1593 = vmatprep.subr.bf16.mxu0 %v1592_v29  ;;  %v1296_v9 = vld [vmem:[%s2784_s3 + $0x138] sm:$0xff]  ;;  %v244_v10 = vld [vmem:[%s2784_s3 + $0x48] sm:$0xff]  ;;  %v1674_v13 = vpack.c.bf16 %v241_v7, %v239_v5  ;;  %v1293_v15 = vld [vmem:[%s2784_s3 + $0x120] sm:$0xff] }
  0x13   :  { %1625 = vmatprep.subr.bf16.mxu1 %v1624_v30  ;;  %v246_v11 = vld [vmem:[%s2784_s3 + $0x58] sm:$0xff]  ;;  %v1648_v14 = vpack.c.bf16 %v1296_v9, %v1294_v8  ;;  %v1295_v16 = vld [vmem:[%s2784_s3 + $0x130] sm:$0xff]  ;;  %v243_v17 = vld [vmem:[%s2784_s3 + $0x40] sm:$0xff]  ;;  %v1892_v9 = vmov 0.0  }
  0x14   :  { %v1676_v18 = vpack.c.bf16 %v246_v11, %v244_v10  ;;  %v245_v19 = vld [vmem:[%s2784_s3 + $0x50] sm:$0xff]  ;;  %v1298_v20 = vld [vmem:[%s2784_s3 + $0x148] sm:$0xff]  ;;  %v1300_v21 = vld [vmem:[%s2784_s3 + $0x158] sm:$0xff]  ;;  %v1650_v24 = vpack.c.bf16 %v1295_v16, %v1293_v15  ;;  %v144_v10 = vlaneseq }
  0x15   :  { %1595 = vmatpush3.bf16.msra.mxu0 %v1592_v29  ;;  %v248_v22 = vld [vmem:[%s2784_s3 + $0x68] sm:$0xff]  ;;  %v250_v23 = vld [vmem:[%s2784_s3 + $0x78] sm:$0xff]  ;;  %v1678_v25 = vpack.c.bf16 %v245_v19, %v243_v17  ;;  %v1652_v26 = vpack.c.bf16 %v1300_v21, %v1298_v20  ;;  %v1297_v27 = vld [vmem:[%s2784_s3 + $0x140] sm:$0xff] }
  0x16   :  { %1627 = vmatpush3.bf16.msra.mxu1 %v1624_v30  ;;  %1597 = vmatprep.subr.bf16.mxu0 %v1596_v35  ;;  %v1299_v28 = vld [vmem:[%s2784_s3 + $0x150] sm:$0xff]  ;;  %v247_v29 = vld [vmem:[%s2784_s3 + $0x60] sm:$0xff]  ;;  %v1680_v30 = vpack.c.bf16 %v250_v23, %v248_v22  ;;  %v1302_v32 = vld [vmem:[%s2784_s3 + $0x168] sm:$0xff]  ;;  %v2223_v11 = vshrl.u32 %v144_v10, 7 }
  0x17   :  { %1629 = vmatprep.subr.bf16.mxu1 %v1628_v36  ;;  %v249_v31 = vld [vmem:[%s2784_s3 + $0x70] sm:$0xff]  ;;  %v1304_v33 = vld [vmem:[%s2784_s3 + $0x178] sm:$0xff]  ;;  %v252_v34 = vld [vmem:[%s2784_s3 + $0x88] sm:$0xff] }
  0x18   :  { %v1682_v37 = vpack.c.bf16 %v249_v31, %v247_v29  ;;  %v1656_v38 = vpack.c.bf16 %v1304_v33, %v1302_v32  ;;  %v1301_v39 = vld [vmem:[%s2784_s3 + $0x160] sm:$0xff]  ;;  %v1303_v40 = vld [vmem:[%s2784_s3 + $0x170] sm:$0xff]  ;;  %v1306_v46 = vld [vmem:[%s2784_s3 + $0x188] sm:$0xff]  ;;  %vm146_vm0 = vcmp.lt.s32.totalorder %v2223_v11, 7  ;;  %vm571_vm2 = vcmp.lt.s32.totalorder %v2223_v11, 6 }
  0x19   :  { %1599 = vmatpush3.bf16.msra.mxu0 %v1596_v35  ;;  %v254_v35 = vld [vmem:[%s2784_s3 + $0x98] sm:$0xff]  ;;  %v251_v43 = vld [vmem:[%s2784_s3 + $0x80] sm:$0xff]  ;;  %v253_v44 = vld [vmem:[%s2784_s3 + $0x90] sm:$0xff]  ;;  %vm1002_vm4 = vcmp.lt.s32.totalorder %v2223_v11, 5  ;;  %vm1105_vm5 = vcmp.lt.s32.totalorder %v2223_v11, 4 }
  0x1a   :  { %1631 = vmatpush3.bf16.msra.mxu1 %v1628_v36  ;;  %1601 = vmatprep.subr.bf16.mxu0 %v1600_v41  ;;  %v1654_v36 = vpack.c.bf16 %v1299_v28, %v1297_v27  ;;  %v1686_v45 = vpack.c.bf16 %v253_v44, %v251_v43  ;;  %v1305_v49 = vld [vmem:[%s2784_s3 + $0x180] sm:$0xff]  ;;  %v1307_v50 = vld [vmem:[%s2784_s3 + $0x190] sm:$0xff]  ;;  %v256_v51 = vld [vmem:[%s2784_s3 + $0xa8] sm:$0xff] }
  0x1b   :  { %1633 = vmatprep.subr.bf16.mxu1 %v1632_v42  ;;  %v1662_v52 = vpack.c.bf16 %v1307_v50, %v1305_v49  ;;  %v255_v54 = vld [vmem:[%s2784_s3 + $0xa0] sm:$0xff]  ;;  %v257_v55 = vld [vmem:[%s2784_s3 + $0xb0] sm:$0xff]  ;;  %v1310_v58 = vld [vmem:[%s2784_s3 + $0x1a8] sm:$0xff] }
  0x1c   :  { %v1312_v59 = vld [vmem:[%s2784_s3 + $0x1b8] sm:$0xff]  ;;  %v1309_v61 = vld [vmem:[%s2784_s3 + $0x1a0] sm:$0xff]  ;;  %v1311_v62 = vld [vmem:[%s2784_s3 + $0x1b0] sm:$0xff] }
  0x1d   :  { %1603 = vmatpush3.bf16.msra.mxu0 %v1600_v41  ;;  %v1684_v41 = vpack.c.bf16 %v254_v35, %v252_v34  ;;  %v1664_v60 = vpack.c.bf16 %v1312_v59, %v1310_v58  ;;  %v261_v4 = vld [vmem:[%s2784_s3 + $0xd0] sm:$0xff]  ;;  %v1320_v7 = vld [vmem:[%s2784_s3 + $0x1d8] sm:$0xff]  ;;  %v1284_v19 = vld [vmem:[%s2785_s2] ss:$0 sm:$0xff] }
  0x1e   :  { %1635 = vmatpush3.bf16.msra.mxu1 %v1632_v42  ;;  %1605 = vmatprep.subr.bf16.mxu0 %v1604_v47  ;;  %v1658_v42 = vpack.c.bf16 %v1303_v40, %v1301_v39  ;;  %v1317_v23 = vld [vmem:[%s2784_s3 + $0x1c0] sm:$0xff]  ;;  %v1323_v33 = vld [vmem:[%s2784_s3 + $0x1f0] sm:$0xff]  ;;  %v1326_v34 = vld [vmem:[%s2784_s3 + $0x208] sm:$0xff] }
  0x1f   :  { %1637 = vmatprep.subr.bf16.mxu1 %v1636_v48  ;;  %v1321_v32 = vld [vmem:[%s2784_s3 + $0x1e0] sm:$0xff]  ;;  %v1328_v35 = vld [vmem:[%s2784_s3 + $0x218] sm:$0xff]  ;;  %v1327_v40 = vld [vmem:[%s2784_s3 + $0x210] sm:$0xff] }
  0x20   :  { %v1325_v39 = vld [vmem:[%s2784_s3 + $0x200] sm:$0xff]  ;;  %v1339_v58 = vld [vmem:[%s2784_s3 + $0x270] sm:$0xff]  ;;  %v1342_v59 = vld [vmem:[%s2784_s3 + $0x288] sm:$0xff] }
  0x21   :  { %1607 = vmatpush3.bf16.msra.mxu0 %v1604_v47  ;;  %v1308_v47 = vld [vmem:[%s2784_s3 + $0x198] sm:$0xff]  ;;  %v1706_v43 = vpack.c.bf16 %v1327_v40, %v1325_v39 }
  0x22   :  { %1639 = vmatpush3.bf16.msra.mxu1 %v1636_v48  ;;  %1641 = vmatprep.subr.bf16.mxu0 %v1640_v53  ;;  %v1660_v48 = vpack.c.bf16 %v1308_v47, %v1306_v46  ;;  %v258_v53 = vld [vmem:[%s2784_s3 + $0xb8] sm:$0xff]  ;;  %v1331_v46 = vld [vmem:[%s2784_s3 + $0x230] sm:$0xff]  ;;  %v1334_v47 = vld [vmem:[%s2784_s3 + $0x248] sm:$0xff] }
  0x23   :  { %1669 = vmatprep.subr.bf16.mxu1 %v1668_v57  ;;  %v1688_v56 = vpack.c.bf16 %v258_v53, %v256_v51  ;;  %v1690_v57 = vpack.c.bf16 %v257_v55, %v255_v54  ;;  %v1333_v51 = vld [vmem:[%s2784_s3 + $0x240] sm:$0xff]  ;;  %v1338_v53 = vld [vmem:[%s2784_s3 + $0x268] sm:$0xff]  ;;  %v1340_v54 = vld [vmem:[%s2784_s3 + $0x278] sm:$0xff] }
  0x24   :  { %1520 = vmatmul.mubr.f32.vlgmr.msra.gmra.mrb[0].mxu0 %v33_v63 }
  0x25   :  { %1555 = vmatmul.mubr.f32.vlgmr.msra.gmra.mrb[0].mxu1 %v33_v63  ;;  %1643 = vmatpush1.bf16.msra.mxu0 %v1642_v0  ;;  %v260_v63 = vld [vmem:[%s2784_s3 + $0xc8] sm:$0xff]  ;;  %v1666_v0 = vpack.c.bf16 %v1311_v62, %v1309_v61 }
  0x26   :  { %1671 = vmatpush1.bf16.msra.mxu1 %v1670_v1  ;;  %1645 = vmatprep.subr.bf16.mxu0 %v1644_v2  ;;  %v262_v1 = vld [vmem:[%s2784_s3 + $0xd8] sm:$0xff]  ;;  %v259_v2 = vld [vmem:[%s2784_s3 + $0xc0] sm:$0xff] }
  0x27   :  { %1673 = vmatprep.subr.bf16.mxu1 %v1672_v6  ;;  %v1692_v3 = vpack.c.bf16 %v262_v1, %v260_v63  ;;  %v1694_v5 = vpack.c.bf16 %v261_v4, %v259_v2  ;;  %v1318_v6 = vld [vmem:[%s2784_s3 + $0x1c8] sm:$0xff]  ;;  %363 = vmatprep.mubr.f32.mxu0 %v1892_v9  ;;  %v1341_v63 = vld [vmem:[%s2784_s3 + $0x280] sm:$0xff] }
  0x28   :  { %v1696_v8 = vpack.c.bf16 %v1320_v7, %v1318_v6  ;;  %448 = vmatprep.mubr.f32.mxu1 %v1892_v9  ;;  %v1347_v2 = vld [vmem:[%s2786_s5 + $0xa0] sm:$0xff]  ;;  %v601_v6 = vld [vmem:[%s2786_s5 + $0x8] sm:$0xff]  ;;  %v1893_v7 = vmov 0.0|0.0  }
  0x29   :  { %1647 = vmatpush1.bf16.msra.mxu0 %v1646_v12  ;;  %v600_v4 = vld [vmem:[%s2786_s5] sm:$0xff] }
  0x2a   :  { %1675 = vmatpush1.bf16.msra.mxu1 %v1674_v13  ;;  %1649 = vmatprep.subr.bf16.mxu0 %v1648_v14 }
  0x2b   :  { %1677 = vmatprep.subr.bf16.mxu1 %v1676_v18 }
  0x2d   :  { %1651 = vmatpush1.bf16.msra.mxu0 %v1650_v24  ;;  %v1319_v24 = vld [vmem:[%s2784_s3 + $0x1d0] sm:$0xff] }
  0x2e   :  { %1679 = vmatpush1.bf16.msra.mxu1 %v1678_v25  ;;  %1653 = vmatprep.subr.bf16.mxu0 %v1652_v26  ;;  %v1322_v25 = vld [vmem:[%s2784_s3 + $0x1e8] sm:$0xff]  ;;  %v1324_v26 = vld [vmem:[%s2784_s3 + $0x1f8] sm:$0xff]  ;;  %v1698_v28 = vpack.c.bf16 %v1319_v24, %v1317_v23 }
  0x2f   :  { %1681 = vmatprep.subr.bf16.mxu1 %v1680_v30  ;;  %v1700_v31 = vpack.c.bf16 %v1324_v26, %v1322_v25  ;;  %v1354_v23 = vld [vmem:[%s2786_s5 + $0xd8] sm:$0xff]  ;;  %v606_v25 = vld [vmem:[%s2786_s5 + $0x30] sm:$0xff] }
  0x30   :  { %v607_v26 = vld [vmem:[%s2786_s5 + $0x38] sm:$0xff] }
  0x31   :  { %1655 = vmatpush1.bf16.msra.mxu0 %v1654_v36  ;;  %v1702_v36 = vpack.c.bf16 %v1323_v33, %v1321_v32  ;;  %v609_v32 = vld [vmem:[%s2786_s5 + $0x48] sm:$0xff] }
  0x32   :  { %1683 = vmatpush1.bf16.msra.mxu1 %v1682_v37  ;;  %1657 = vmatprep.subr.bf16.mxu0 %v1656_v38  ;;  %v1704_v38 = vpack.c.bf16 %v1328_v35, %v1326_v34  ;;  %v1357_v35 = vld [vmem:[%s2786_s5 + $0xf0] sm:$0xff] }
  0x33   :  { %1685 = vmatprep.subr.bf16.mxu1 %v1684_v41  ;;  %v1330_v41 = vld [vmem:[%s2784_s3 + $0x228] sm:$0xff] }
  0x35   :  { %1659 = vmatpush1.bf16.msra.mxu0 %v1658_v42  ;;  %v1332_v42 = vld [vmem:[%s2784_s3 + $0x238] sm:$0xff] }
  0x36   :  { %1687 = vmatpush1.bf16.msra.mxu1 %v1686_v45  ;;  %1661 = vmatprep.subr.bf16.mxu0 %v1660_v48  ;;  %v1708_v44 = vpack.c.bf16 %v1332_v42, %v1330_v41  ;;  %v1329_v45 = vld [vmem:[%s2784_s3 + $0x220] sm:$0xff]  ;;  %v1336_v48 = vld [vmem:[%s2784_s3 + $0x258] sm:$0xff]  ;;  %v1360_v42 = vld [vmem:[%s2786_s5 + $0x108] sm:$0xff] }
  0x37   :  { %1689 = vmatprep.subr.bf16.mxu1 %v1688_v56  ;;  %v1710_v49 = vpack.c.bf16 %v1331_v46, %v1329_v45  ;;  %v1712_v50 = vpack.c.bf16 %v1336_v48, %v1334_v47  ;;  %v1716_v56 = vpack.c.bf16 %v1340_v54, %v1338_v53  ;;  %v1359_v41 = vld [vmem:[%s2786_s5 + $0x100] sm:$0xff]  ;;  %v613_v45 = vld [vmem:[%s2786_s5 + $0x68] sm:$0xff]  ;;  %v1361_v47 = vld [vmem:[%s2786_s5 + $0x110] sm:$0xff] }
  0x38   :  { %v1362_v48 = vld [vmem:[%s2786_s5 + $0x118] sm:$0xff]  ;;  %v1363_v53 = vld [vmem:[%s2786_s5 + $0x120] sm:$0xff]  ;;  %v1364_v54 = vld [vmem:[%s2786_s5 + $0x128] sm:$0xff] }
  0x39   :  { %1663 = vmatpush1.bf16.msra.mxu0 %v1662_v52  ;;  %v1335_v52 = vld [vmem:[%s2784_s3 + $0x250] sm:$0xff] }
  0x3a   :  { %1691 = vmatpush1.bf16.msra.mxu1 %v1690_v57  ;;  %1665 = vmatprep.subr.bf16.mxu0 %v1664_v60  ;;  %v1714_v55 = vpack.c.bf16 %v1335_v52, %v1333_v51  ;;  %v1337_v57 = vld [vmem:[%s2784_s3 + $0x260] sm:$0xff]  ;;  %v1344_v60 = vld [vmem:[%s2784_s3 + $0x298] sm:$0xff] }
  0x3b   :  { %1693 = vmatprep.subr.bf16.mxu1 %v1692_v3  ;;  %v1718_v61 = vpack.c.bf16 %v1339_v58, %v1337_v57  ;;  %v1720_v62 = vpack.c.bf16 %v1344_v60, %v1342_v59  ;;  %v1348_v3 = vld [vmem:[%s2786_s5 + $0xa8] sm:$0xff]  ;;  %v615_v51 = vld [vmem:[%s2786_s5 + $0x78] sm:$0xff]  ;;  %v1365_v59 = vld [vmem:[%s2786_s5 + $0x130] sm:$0xff] }
  0x3c   :  { %v617_v57 = vld [vmem:[%s2786_s5 + $0x88] sm:$0xff]  ;;  %v1366_v60 = vld [vmem:[%s2786_s5 + $0x138] sm:$0xff] }
  0x3d   :  { %1667 = vmatpush1.bf16.msra.mxu0 %v1666_v0  ;;  %v1343_v0 = vld [vmem:[%s2784_s3 + $0x290] sm:$0xff] }
  0x3e   :  { %1695 = vmatpush1.bf16.msra.mxu1 %v1694_v5  ;;  %1697 = vmatprep.subr.bf16.mxu0 %v1696_v8  ;;  %v1722_v1 = vpack.c.bf16 %v1343_v0, %v1341_v63  ;;  %v1725_v5 = vpack.c.bf16 %v1348_v3, %v1347_v2  ;;  %v1755_v8 = vpack.c.bf16 %v601_v6, %v600_v4  ;;  %v619_v63 = vld [vmem:[%s2786_s5 + $0x98] sm:$0xff] }
  0x3f   :  { %1724 = vmatprep.subr.bf16.mxu1 %v1893_v7 }
  0xf7   :  { %v1521_v12 = vpop.f32.mrb[0].mxu0 }
  0xf8   :  { %v143_v13 = vrot.slane %v1521_v12, 1  ;;  %v133_v14 = vpop.f32.mrb[1].mxu0  ;;  %v1556_v15 = vpop.f32.mrb[0].mxu1  ;;  %v1350_v12 = vld [vmem:[%s2786_s5 + $0xb8] sm:$0xff] }
  0xf9   :  { %v142_v16 = vrot.slane %v133_v14, 1  ;;  %v215_v17 = vpop.f32.mrb[1].mxu1 }
  0xfb   :  { %v148_v18 = vsel %vm146_vm0, %v143_v13, %v142_v16  ;;  %v147_v20 = vsel %vm146_vm0, %v142_v16, %v143_v13  ;;  %v602_v13 = vld [vmem:[%s2786_s5 + $0x10] sm:$0xff] }
  0xfc   :  { %v221_v21 = vadd.f32 %v1556_v15, %v148_v18  ;;  %v216_v22 = vadd.f32 %v215_v17, %v147_v20  ;;  %v603_v15 = vld [vmem:[%s2786_s5 + $0x18] sm:$0xff]  ;;  %v1351_v17 = vld [vmem:[%s2786_s5 + $0xc0] sm:$0xff]  ;;  %v1352_v18 = vld [vmem:[%s2786_s5 + $0xc8] sm:$0xff] }
  0xfd   :  { %v1758_v16 = vpack.c.bf16 %v603_v15, %v602_v13  ;;  %v1731_v20 = vpack.c.bf16 %v1352_v18, %v1351_v17 }
  0xfe   :  { %v231_v27 = vadd.f32 %v1284_v19, %v216_v22  ;;  %v232_v29 = vadd.f32 %v1284_v19, %v221_v21  ;;  %v604_v19 = vld [vmem:[%s2786_s5 + $0x20] sm:$0xff]  ;;  %v605_v21 = vld [vmem:[%s2786_s5 + $0x28] sm:$0xff]  ;;  %v1353_v22 = vld [vmem:[%s2786_s5 + $0xd0] sm:$0xff] }
  0xff   :  { %v1761_v24 = vpack.c.bf16 %v605_v21, %v604_v19 }
 0x100   :  { %v233_v30 = vmax.f32 %v231_v27, 0.0  ;;  %v234_v37 = vmax.f32 %v232_v29, 0.0  ;;  %v1734_v27 = vpack.c.bf16 %v1354_v23, %v1353_v22  ;;  %v1355_v29 = vld [vmem:[%s2786_s5 + $0xe0] sm:$0xff] }
 0x102   :  { %1313 = vmatmul.mubr.msk.f32.vlgmr.msra.gmra.mrb[2].mxu0 %vm292_vm1, %v233_v30  ;;  %1315 = vmatmul.mubr.msk.f32.vlgmr.msra.gmra.mrb[2].mxu1 %vm292_vm1, %v233_v30 }
 0x103   :  { %1699 = vmatpush1.bf16.msra.mxu0 %v1698_v28  ;;  %369 = vmatprep.mubr.f32.mxu0 %v1892_v9  ;;  %v1764_v28 = vpack.c.bf16 %v607_v26, %v606_v25  ;;  %v584_v26 = vsub.s32 0, %v2223_v11 }
 0x104   :  { %454 = vmatprep.mubr.f32.mxu1 %v1892_v9  ;;  %1701 = vmatprep.subr.bf16.mxu0 %v1700_v31  ;;  %v608_v31 = vld [vmem:[%s2786_s5 + $0x40] sm:$0xff] }
 0x105   :  { %1726 = vmatpush1.bf16.msra.mxu1 %v1725_v5  ;;  %v1767_v34 = vpack.c.bf16 %v609_v32, %v608_v31 }
 0x106   :  { %1314 = vmatmul.mubr.msk.f32.gmra.mrb[4].mxu0 %vm292_vm1, %v234_v37  ;;  %1316 = vmatmul.mubr.msk.f32.gmra.mrb[4].mxu1 %vm292_vm1, %v234_v37 }
 0x107   :  { %1703 = vmatpush1.bf16.msra.mxu0 %v1702_v36  ;;  %554 = vmatprep.mubr.f32.mxu0 %v1892_v9  ;;  %v1358_v36 = vld [vmem:[%s2786_s5 + $0xf8] sm:$0xff] }
 0x108   :  { %1705 = vmatprep.subr.bf16.mxu0 %v1704_v38  ;;  %1727 = vmatprep.subr.bf16.mxu1 %v1893_v7  ;;  %v611_v38 = vld [vmem:[%s2786_s5 + $0x58] sm:$0xff]  ;;  %v1740_v39 = vpack.c.bf16 %v1358_v36, %v1357_v35 }
 0x10b   :  { %1707 = vmatpush1.bf16.msra.mxu0 %v1706_v43  ;;  %v612_v43 = vld [vmem:[%s2786_s5 + $0x60] sm:$0xff] }
 0x10c   :  { %1709 = vmatprep.subr.bf16.mxu0 %v1708_v44  ;;  %v1743_v44 = vpack.c.bf16 %v1360_v42, %v1359_v41  ;;  %v1773_v46 = vpack.c.bf16 %v613_v45, %v612_v43  ;;  %v1371_v45 = vld [vmem:[%s2786_s5 + $0x140] sm:$0xff] }
 0x10f   :  { %1711 = vmatpush1.bf16.msra.mxu0 %v1710_v49  ;;  %v614_v49 = vld [vmem:[%s2786_s5 + $0x70] sm:$0xff] }
 0x110   :  { %1713 = vmatprep.subr.bf16.mxu0 %v1712_v50  ;;  %v1746_v50 = vpack.c.bf16 %v1362_v48, %v1361_v47  ;;  %v1776_v52 = vpack.c.bf16 %v615_v51, %v614_v49  ;;  %v1372_v47 = vld [vmem:[%s2786_s5 + $0x148] sm:$0xff]  ;;  %v1393_v48 = vld [vmem:[%s2786_s5 + $0x1e0] sm:$0xff] }
 0x111   :  { %v1394_v49 = vld [vmem:[%s2786_s5 + $0x1e8] sm:$0xff] }
 0x113   :  { %1715 = vmatpush1.bf16.msra.mxu0 %v1714_v55  ;;  %v616_v55 = vld [vmem:[%s2786_s5 + $0x80] sm:$0xff] }
 0x114   :  { %1717 = vmatprep.subr.bf16.mxu0 %v1716_v56  ;;  %v1749_v56 = vpack.c.bf16 %v1364_v54, %v1363_v53  ;;  %v1779_v58 = vpack.c.bf16 %v617_v57, %v616_v55  ;;  %v1785_v53 = vpack.c.bf16 %v1372_v47, %v1371_v45  ;;  %v1815_v54 = vpack.c.bf16 %v1394_v49, %v1393_v48  ;;  %v1373_v55 = vld [vmem:[%s2786_s5 + $0x150] sm:$0xff]  ;;  %v1390_v47 = vld [vmem:[%s2786_s5 + $0x1d8] sm:$0xff] }
 0x115   :  { %v1411_v48 = vld [vmem:[%s2786_s5 + $0x270] sm:$0xff]  ;;  %v1412_v49 = vld [vmem:[%s2786_s5 + $0x278] sm:$0xff] }
 0x117   :  { %1719 = vmatpush1.bf16.msra.mxu0 %v1718_v61  ;;  %v618_v61 = vld [vmem:[%s2786_s5 + $0x90] sm:$0xff] }
 0x118   :  { %1721 = vmatprep.subr.bf16.mxu0 %v1720_v62  ;;  %v1752_v62 = vpack.c.bf16 %v1366_v60, %v1365_v59  ;;  %v1782_v0 = vpack.c.bf16 %v619_v63, %v618_v61  ;;  %v1395_v59 = vld [vmem:[%s2786_s5 + $0x1f0] sm:$0xff]  ;;  %v1396_v60 = vld [vmem:[%s2786_s5 + $0x1f8] sm:$0xff] }
 0x119   :  { %v1818_v63 = vpack.c.bf16 %v1396_v60, %v1395_v59  ;;  %v1419_v60 = vld [vmem:[%s2786_s5 + $0x2a0] sm:$0xff] }
 0x11b   :  { %1723 = vmatpush1.bf16.msra.mxu0 %v1722_v1 }
 0x11c   :  { %1754 = vmatprep.subr.bf16.mxu0 %v1893_v7 }
 0x11e   :  { %1345 = vmatmul.mubr.msk.f32.vlgmr.msra.gmra.mrb[6].mxu0 %vm292_vm1, %v233_v30  ;;  %v1356_v30 = vld [vmem:[%s2786_s5 + $0xe8] sm:$0xff] }
 0x11f   :  { %560 = vmatprep.mubr.f32.mxu0 %v1892_v9  ;;  %1756 = vmatpush1.bf16.msra.mxu0 %v1755_v8  ;;  %v1349_v9 = vld [vmem:[%s2786_s5 + $0xb0] sm:$0xff]  ;;  %v1737_v33 = vpack.c.bf16 %v1356_v30, %v1355_v29 }
 0x120   :  { %1757 = vmatprep.subr.bf16.mxu0 %v1893_v7  ;;  %v1728_v14 = vpack.c.bf16 %v1350_v12, %v1349_v9 }
 0x122   :  { %1346 = vmatmul.mubr.msk.f32.gmra.mrb[8].mxu0 %vm292_vm1, %v234_v37  ;;  %1729 = vmatpush1.bf16.msra.mxu1 %v1728_v14  ;;  %v610_v37 = vld [vmem:[%s2786_s5 + $0x50] sm:$0xff] }
 0x123   :  { %1759 = vmatpush1.bf16.msra.mxu0 %v1758_v16  ;;  %1730 = vmatprep.subr.bf16.mxu1 %v1893_v7  ;;  %v1770_v40 = vpack.c.bf16 %v611_v38, %v610_v37 }
 0x124   :  { %1760 = vmatprep.subr.bf16.mxu0 %v1893_v7 }
 0x126   :  { %1732 = vmatpush1.bf16.msra.mxu1 %v1731_v20 }
 0x127   :  { %1762 = vmatpush1.bf16.msra.mxu0 %v1761_v24  ;;  %1733 = vmatprep.subr.bf16.mxu1 %v1893_v7 }
 0x128   :  { %1763 = vmatprep.subr.bf16.mxu0 %v1893_v7 }
 0x12a   :  { %1735 = vmatpush1.bf16.msra.mxu1 %v1734_v27  ;;  %v580_v27 = vld [vmem:[%s2787_s4] sm:$0x3] }
 0x12b   :  { %1765 = vmatpush1.bf16.msra.mxu0 %v1764_v28  ;;  %1736 = vmatprep.subr.bf16.mxu1 %v1893_v7  ;;  %v588_v28 = vsub.s32 1, %v2223_v11  ;;  %v1438_v11 = vld [vmem:[%s2790_s8] ss:$0 sm:$0xff] }
 0x12c   :  { %1766 = vmatprep.subr.bf16.mxu0 %v1893_v7 }
 0x12d   :  { %v589_v38 = vrot.slane %v580_v27, %v588_v28  ;;  %v1383_v28 = vld [vmem:[%s2786_s5 + $0x1a0] sm:$0xff] }
 0x12e   :  { %1738 = vmatpush1.bf16.msra.mxu1 %v1737_v33 }
 0x12f   :  { %1768 = vmatpush1.bf16.msra.mxu0 %v1767_v34  ;;  %1739 = vmatprep.subr.bf16.mxu1 %v1893_v7  ;;  %v585_v34 = vrot.slane %v580_v27, %v584_v26 }
 0x130   :  { %1769 = vmatprep.subr.bf16.mxu0 %v1893_v7 }
 0x132   :  { %1741 = vmatpush1.bf16.msra.mxu1 %v1740_v39 }
 0x133   :  { %1771 = vmatpush1.bf16.msra.mxu0 %v1770_v40  ;;  %1742 = vmatprep.subr.bf16.mxu1 %v1893_v7 }
 0x134   :  { %1772 = vmatprep.subr.bf16.mxu0 %v1893_v7 }
 0x136   :  { %1744 = vmatpush1.bf16.msra.mxu1 %v1743_v44 }
 0x137   :  { %1774 = vmatpush1.bf16.msra.mxu0 %v1773_v46  ;;  %1745 = vmatprep.subr.bf16.mxu1 %v1893_v7 }
 0x138   :  { %1775 = vmatprep.subr.bf16.mxu0 %v1893_v7 }
 0x13a   :  { %1747 = vmatpush1.bf16.msra.mxu1 %v1746_v50 }
 0x13b   :  { %1777 = vmatpush1.bf16.msra.mxu0 %v1776_v52  ;;  %1748 = vmatprep.subr.bf16.mxu1 %v1893_v7 }
 0x13c   :  { %1778 = vmatprep.subr.bf16.mxu0 %v1893_v7 }
 0x13e   :  { %1750 = vmatpush1.bf16.msra.mxu1 %v1749_v56 }
 0x13f   :  { %1780 = vmatpush1.bf16.msra.mxu0 %v1779_v58  ;;  %1751 = vmatprep.subr.bf16.mxu1 %v1893_v7  ;;  %v1374_v58 = vld [vmem:[%s2786_s5 + $0x158] sm:$0xff] }
 0x140   :  { %1781 = vmatprep.subr.bf16.mxu0 %v1893_v7 }
 0x142   :  { %1753 = vmatpush1.bf16.msra.mxu1 %v1752_v62  ;;  %v1788_v62 = vpack.c.bf16 %v1374_v58, %v1373_v55  ;;  %v1418_v58 = vld [vmem:[%s2786_s5 + $0x298] sm:$0xff] }
 0x143   :  { %1783 = vmatpush1.bf16.msra.mxu0 %v1782_v0  ;;  %1784 = vmatprep.subr.bf16.mxu1 %v1893_v7  ;;  %v1375_v0 = vld [vmem:[%s2786_s5 + $0x160] sm:$0xff] }
 0x144   :  { %1814 = vmatprep.subr.bf16.mxu0 %v1893_v7 }
 0x1d5   :  { %v365_v1 = vpop.f32.mrb[2].mxu0  ;;  %v450_v2 = vpop.f32.mrb[2].mxu1 }
 0x1d6   :  { %v367_v3 = vpop.f32.mrb[3].mxu0  ;;  %v452_v4 = vpop.f32.mrb[3].mxu1  ;;  %v376_v8 = vrot.slane %v365_v1, 1 }
 0x1d7   :  { %v377_v14 = vrot.slane %v367_v3, 1  ;;  %v1397_v3 = vld [vmem:[%s2786_s5 + $0x200] sm:$0xff] }
 0x1d9   :  { %v371_v5 = vpop.f32.mrb[4].mxu0  ;;  %v456_v6 = vpop.f32.mrb[4].mxu1 }
 0x1da   :  { %v378_v9 = vrot.slane %v371_v5, 1  ;;  %v373_v12 = vpop.f32.mrb[5].mxu0  ;;  %v458_v13 = vpop.f32.mrb[5].mxu1 }
 0x1db   :  { %v379_v15 = vrot.slane %v373_v12, 1  ;;  %v1399_v12 = vld [vmem:[%s2786_s5 + $0x210] sm:$0xff] }
 0x1dc   :  { %v380_v16 = vsel %vm146_vm0, %v376_v8, %v378_v9  ;;  %v382_v17 = vsel %vm146_vm0, %v378_v9, %v376_v8  ;;  %v1377_v8 = vld [vmem:[%s2786_s5 + $0x170] sm:$0xff]  ;;  %v1378_v9 = vld [vmem:[%s2786_s5 + $0x178] sm:$0xff] }
 0x1dd   :  { %v451_v18 = vadd.f32 %v450_v2, %v380_v16  ;;  %v457_v19 = vadd.f32 %v456_v6, %v382_v17  ;;  %v381_v20 = vsel %vm146_vm0, %v377_v14, %v379_v15  ;;  %v383_v21 = vsel %vm146_vm0, %v379_v15, %v377_v14  ;;  %v1376_v2 = vld [vmem:[%s2786_s5 + $0x168] sm:$0xff]  ;;  %v1379_v16 = vld [vmem:[%s2786_s5 + $0x180] sm:$0xff] }
 0x1de   :  { %v453_v22 = vadd.f32 %v452_v4, %v381_v20  ;;  %v459_v23 = vadd.f32 %v458_v13, %v383_v21  ;;  %v1398_v4 = vld [vmem:[%s2786_s5 + $0x208] sm:$0xff]  ;;  %v1791_v5 = vpack.c.bf16 %v1376_v2, %v1375_v0  ;;  %v1400_v13 = vld [vmem:[%s2786_s5 + $0x218] sm:$0xff]  ;;  %v1794_v14 = vpack.c.bf16 %v1378_v9, %v1377_v8  ;;  %v1421_v0 = vld [vmem:[%s2786_s5 + $0x2b0] sm:$0xff] }
 0x1df   :  { %v1821_v6 = vpack.c.bf16 %v1398_v4, %v1397_v3  ;;  %v1824_v15 = vpack.c.bf16 %v1400_v13, %v1399_v12  ;;  %v1380_v17 = vld [vmem:[%s2786_s5 + $0x188] sm:$0xff]  ;;  %v1422_v2 = vld [vmem:[%s2786_s5 + $0x2b8] sm:$0xff]  ;;  %v1427_v12 = vld [vmem:[%s2786_s5 + $0x2e0] sm:$0xff] }
 0x1e0   :  { %v1797_v20 = vpack.c.bf16 %v1380_v17, %v1379_v16  ;;  %v1854_v3 = vpack.c.bf16 %v1422_v2, %v1421_v0  ;;  %v1424_v4 = vld [vmem:[%s2786_s5 + $0x2c8] sm:$0xff]  ;;  %v1426_v8 = vld [vmem:[%s2786_s5 + $0x2d8] sm:$0xff] }
 0x1e1   :  { %v1428_v13 = vld [vmem:[%s2786_s5 + $0x2e8] sm:$0xff]  ;;  %v1430_v16 = vld [vmem:[%s2786_s5 + $0x2f8] sm:$0xff] }
 0x1f1   :  { %v556_v24 = vpop.f32.mrb[6].mxu0 }
 0x1f2   :  { %v558_v25 = vpop.f32.mrb[7].mxu0  ;;  %v567_v30 = vrot.slane %v556_v24, 2  ;;  %v1403_v24 = vld [vmem:[%s2786_s5 + $0x230] sm:$0xff] }
 0x1f3   :  { %v568_v33 = vrot.slane %v558_v25, 2  ;;  %v1404_v25 = vld [vmem:[%s2786_s5 + $0x238] sm:$0xff] }
 0x1f4   :  { %v1830_v27 = vpack.c.bf16 %v1404_v25, %v1403_v24  ;;  %v1121_v24 = vld [vmem:[%s2788_s7] sm:$0xff]  ;;  %v1122_v25 = vld [vmem:[%s2788_s7 + $0x8] sm:$0xff] }
 0x1f5   :  { %v562_v29 = vpop.f32.mrb[8].mxu0 }
 0x1f6   :  { %v569_v31 = vrot.slane %v562_v29, 2  ;;  %v564_v32 = vpop.f32.mrb[9].mxu0  ;;  %v1384_v29 = vld [vmem:[%s2786_s5 + $0x1a8] sm:$0xff] }
 0x1f7   :  { %v570_v35 = vrot.slane %v564_v32, 2  ;;  %v1803_v32 = vpack.c.bf16 %v1384_v29, %v1383_v28  ;;  %v1127_v29 = vld [vmem:[%s2788_s7 + $0x30] sm:$0xff] }
 0x1f8   :  { %v572_v36 = vsel %vm571_vm2, %v567_v30, %v569_v31  ;;  %v574_v37 = vsel %vm571_vm2, %v569_v31, %v567_v30  ;;  %v1405_v30 = vld [vmem:[%s2786_s5 + $0x240] sm:$0xff]  ;;  %v1406_v31 = vld [vmem:[%s2786_s5 + $0x248] sm:$0xff] }
 0x1f9   :  { %v576_v39 = vadd.f32 %v572_v36, %v451_v18  ;;  %v578_v40 = vadd.f32 %v574_v37, %v457_v19  ;;  %v573_v41 = vsel %vm571_vm2, %v568_v33, %v570_v35  ;;  %v575_v42 = vsel %vm571_vm2, %v570_v35, %v568_v33  ;;  %v1401_v18 = vld [vmem:[%s2786_s5 + $0x220] sm:$0xff]  ;;  %v1402_v19 = vld [vmem:[%s2786_s5 + $0x228] sm:$0xff]  ;;  %v1386_v35 = vld [vmem:[%s2786_s5 + $0x1b8] sm:$0xff] }
 0x1fa   :  { %v577_v43 = vadd.f32 %v573_v41, %v453_v22  ;;  %v579_v44 = vadd.f32 %v575_v42, %v459_v23  ;;  %v1827_v21 = vpack.c.bf16 %v1402_v19, %v1401_v18  ;;  %v1381_v22 = vld [vmem:[%s2786_s5 + $0x190] sm:$0xff]  ;;  %v1382_v23 = vld [vmem:[%s2786_s5 + $0x198] sm:$0xff]  ;;  %v1833_v33 = vpack.c.bf16 %v1406_v31, %v1405_v30  ;;  %v1388_v41 = vld [vmem:[%s2786_s5 + $0x1c8] sm:$0xff] }
 0x1fb   :  { %v592_v46 = vadd.f32 %v585_v34, %v576_v39  ;;  %v594_v56 = vadd.f32 %v585_v34, %v578_v40  ;;  %v1800_v26 = vpack.c.bf16 %v1382_v23, %v1381_v22  ;;  %v1385_v34 = vld [vmem:[%s2786_s5 + $0x1b0] sm:$0xff]  ;;  %v1408_v37 = vld [vmem:[%s2786_s5 + $0x258] sm:$0xff]  ;;  %v1387_v40 = vld [vmem:[%s2786_s5 + $0x1c0] sm:$0xff] }
 0x1fc   :  { %v593_v50 = vadd.f32 %v589_v38, %v577_v43  ;;  %v595_v51 = vadd.f32 %v589_v38, %v579_v44  ;;  %v1407_v36 = vld [vmem:[%s2786_s5 + $0x250] sm:$0xff]  ;;  %v1806_v38 = vpack.c.bf16 %v1386_v35, %v1385_v34  ;;  %v1409_v42 = vld [vmem:[%s2786_s5 + $0x260] sm:$0xff]  ;;  %v1410_v43 = vld [vmem:[%s2786_s5 + $0x268] sm:$0xff]  ;;  %v1809_v44 = vpack.c.bf16 %v1388_v41, %v1387_v40 }
 0x1fd   :  { %v2502_v57 = vmax.f32 %v592_v46, 0.0  ;;  %v2524_v1 = vmax.f32 %v594_v56, 0.0  ;;  %v1836_v39 = vpack.c.bf16 %v1408_v37, %v1407_v36  ;;  %v1839_v45 = vpack.c.bf16 %v1410_v43, %v1409_v42  ;;  %v1389_v46 = vld [vmem:[%s2786_s5 + $0x1d0] sm:$0xff]  ;;  %v1431_v18 = vld [vmem:[%s2786_s5 + $0x300] sm:$0xff]  ;;  %v1432_v19 = vld [vmem:[%s2786_s5 + $0x308] sm:$0xff] }
 0x1fe   :  { %v2497_v52 = vmax.f32 %v593_v50, 0.0  ;;  %v2517_v61 = vmax.f32 %v595_v51, 0.0  ;;  %v1812_v50 = vpack.c.bf16 %v1390_v47, %v1389_v46  ;;  %v1842_v51 = vpack.c.bf16 %v1412_v49, %v1411_v48  ;;  %v1417_v56 = vld [vmem:[%s2786_s5 + $0x290] sm:$0xff]  ;;  %v1434_v22 = vld [vmem:[%s2786_s5 + $0x318] sm:$0xff] }
 0x1ff   :  { %v1848_v59 = vpack.c.bf16 %v1418_v58, %v1417_v56  ;;  %v1128_v30 = vld [vmem:[%s2788_s7 + $0x38] sm:$0xff] }
 0x200   :  { %1367 = vmatprep.mubr.msk.f32.mxu1 %vm641_vm3, %v2497_v52  ;;  %1369 = vmatprep.mubr.msk.f32.mxu0 %vm641_vm3, %v2497_v52  ;;  %v1886_v31 = vpack.c.bf16 %v1128_v30, %v1127_v29 }
 0x201   :  { %713 = vmatmul.mubr.f32.vlgmr.msra.gmra.mrb[6].mxu1 %v2502_v57  ;;  %792 = vmatmul.mubr.f32.vlgmr.msra.gmra.mrb[10].mxu0 %v2502_v57 }
 0x202   :  { %1786 = vmatpush1.bf16.msra.mxu1 %v1785_v53  ;;  %1816 = vmatpush1.bf16.msra.mxu0 %v1815_v54  ;;  %v1415_v53 = vld [vmem:[%s2786_s5 + $0x280] sm:$0xff]  ;;  %v1416_v54 = vld [vmem:[%s2786_s5 + $0x288] sm:$0xff] }
 0x203   :  { %1368 = vmatprep.mubr.msk.f32.mxu1 %vm641_vm3, %v2517_v61  ;;  %1370 = vmatprep.mubr.msk.f32.mxu0 %vm641_vm3, %v2517_v61  ;;  %v1845_v55 = vpack.c.bf16 %v1416_v54, %v1415_v53 }
 0x204   :  { %1787 = vmatprep.subr.bf16.mxu1 %v1893_v7  ;;  %1817 = vmatprep.subr.bf16.mxu0 %v1893_v7 }
 0x205   :  { %718 = vmatmul.mubr.f32.gmra.mrb[8].mxu1 %v2524_v1  ;;  %797 = vmatmul.mubr.f32.gmra.mrb[12].mxu0 %v2524_v1 }
 0x206   :  { %1789 = vmatpush1.bf16.msra.mxu1 %v1788_v62  ;;  %1819 = vmatpush1.bf16.msra.mxu0 %v1818_v63  ;;  %v1420_v62 = vld [vmem:[%s2786_s5 + $0x2a8] sm:$0xff] }
 0x207   :  { %1391 = vmatprep.mubr.msk.f32.mxu1 %vm641_vm3, %v2497_v52  ;;  %1413 = vmatprep.mubr.msk.f32.mxu0 %vm641_vm3, %v2497_v52  ;;  %v1851_v63 = vpack.c.bf16 %v1420_v62, %v1419_v60 }
 0x208   :  { %1790 = vmatprep.subr.bf16.mxu1 %v1893_v7  ;;  %1820 = vmatprep.subr.bf16.mxu0 %v1893_v7 }
 0x20a   :  { %1792 = vmatpush1.bf16.msra.mxu1 %v1791_v5  ;;  %1822 = vmatpush1.bf16.msra.mxu0 %v1821_v6  ;;  %v1425_v6 = vld [vmem:[%s2786_s5 + $0x2d0] sm:$0xff] }
 0x20b   :  { %1793 = vmatprep.subr.bf16.mxu1 %v1893_v7  ;;  %1823 = vmatprep.subr.bf16.mxu0 %v1893_v7  ;;  %v1860_v9 = vpack.c.bf16 %v1426_v8, %v1425_v6 }
 0x20e   :  { %1795 = vmatpush1.bf16.msra.mxu1 %v1794_v14  ;;  %1825 = vmatpush1.bf16.msra.mxu0 %v1824_v15  ;;  %v1863_v14 = vpack.c.bf16 %v1428_v13, %v1427_v12  ;;  %v1429_v15 = vld [vmem:[%s2786_s5 + $0x2f0] sm:$0xff] }
 0x20f   :  { %1796 = vmatprep.subr.bf16.mxu1 %v1893_v7  ;;  %1826 = vmatprep.subr.bf16.mxu0 %v1893_v7  ;;  %v1866_v17 = vpack.c.bf16 %v1430_v16, %v1429_v15  ;;  %v1437_v16 = vld [vmem:[%s2789_s6] ss:$0 sm:$0xff] }
 0x212   :  { %1798 = vmatpush1.bf16.msra.mxu1 %v1797_v20  ;;  %1828 = vmatpush1.bf16.msra.mxu0 %v1827_v21  ;;  %v1869_v20 = vpack.c.bf16 %v1432_v19, %v1431_v18  ;;  %v1433_v21 = vld [vmem:[%s2786_s5 + $0x310] sm:$0xff] }
 0x213   :  { %1799 = vmatprep.subr.bf16.mxu1 %v1893_v7  ;;  %1829 = vmatprep.subr.bf16.mxu0 %v1893_v7  ;;  %v1872_v23 = vpack.c.bf16 %v1434_v22, %v1433_v21 }
 0x216   :  { %1801 = vmatpush1.bf16.msra.mxu1 %v1800_v26  ;;  %1831 = vmatpush1.bf16.msra.mxu0 %v1830_v27  ;;  %v1874_v26 = vpack.c.bf16 %v1122_v25, %v1121_v24  ;;  %v1126_v27 = vld [vmem:[%s2788_s7 + $0x28] sm:$0xff] }
 0x217   :  { %1802 = vmatprep.subr.bf16.mxu1 %v1893_v7  ;;  %1832 = vmatprep.subr.bf16.mxu0 %v1893_v7 }
 0x21a   :  { %1804 = vmatpush1.bf16.msra.mxu1 %v1803_v32  ;;  %1834 = vmatpush1.bf16.msra.mxu0 %v1833_v33 }
 0x21b   :  { %1805 = vmatprep.subr.bf16.mxu1 %v1893_v7  ;;  %1835 = vmatprep.subr.bf16.mxu0 %v1893_v7 }
 0x21e   :  { %1807 = vmatpush1.bf16.msra.mxu1 %v1806_v38  ;;  %1837 = vmatpush1.bf16.msra.mxu0 %v1836_v39 }
 0x21f   :  { %1808 = vmatprep.subr.bf16.mxu1 %v1893_v7  ;;  %1838 = vmatprep.subr.bf16.mxu0 %v1893_v7 }
 0x222   :  { %1810 = vmatpush1.bf16.msra.mxu1 %v1809_v44  ;;  %1840 = vmatpush1.bf16.msra.mxu0 %v1839_v45 }
 0x223   :  { %1811 = vmatprep.subr.bf16.mxu1 %v1893_v7  ;;  %1841 = vmatprep.subr.bf16.mxu0 %v1893_v7 }
 0x226   :  { %1813 = vmatpush1.bf16.msra.mxu1 %v1812_v50  ;;  %1843 = vmatpush1.bf16.msra.mxu0 %v1842_v51 }
 0x227   :  { %1844 = vmatprep.subr.bf16.mxu1 %v1893_v7  ;;  %1875 = vmatprep.subr.bf16.mxu0 %v1874_v26 }
 0x229   :  { %888 = vmatmul.mubr.f32.vlgmr.msra.gmra.mrb[10].mxu1 %v2502_v57  ;;  %990 = vmatmul.mubr.f32.vlgmr.msra.gmra.mrb[14].mxu0 %v2502_v57 }
 0x22a   :  { %1392 = vmatprep.mubr.msk.f32.mxu1 %vm641_vm3, %v2517_v61  ;;  %1414 = vmatprep.mubr.msk.f32.mxu0 %vm641_vm3, %v2517_v61 }
 0x22b   :  { %1846 = vmatpush1.bf16.msra.mxu1 %v1845_v55  ;;  %1877 = vmatpush3.bf16.msra.mxu0 %v1874_v26 }
 0x22c   :  { %1847 = vmatprep.subr.bf16.mxu1 %v1893_v7 }
 0x22d   :  { %893 = vmatmul.mubr.f32.gmra.mrb[12].mxu1 %v2524_v1  ;;  %995 = vmatmul.mubr.f32.gmra.mrb[16].mxu0 %v2524_v1 }
 0x22e   :  { %1435 = vmatprep.mubr.msk.f32.mxu1 %vm641_vm3, %v2497_v52  ;;  %v1423_v52 = vld [vmem:[%s2786_s5 + $0x2c0] sm:$0xff] }
 0x22f   :  { %1849 = vmatpush1.bf16.msra.mxu1 %v1848_v59  ;;  %v1857_v5 = vpack.c.bf16 %v1424_v4, %v1423_v52 }
 0x230   :  { %1850 = vmatprep.subr.bf16.mxu1 %v1893_v7 }
 0x233   :  { %1852 = vmatpush1.bf16.msra.mxu1 %v1851_v63 }
 0x234   :  { %1853 = vmatprep.subr.bf16.mxu1 %v1893_v7 }
 0x237   :  { %1855 = vmatpush1.bf16.msra.mxu1 %v1854_v3 }
 0x238   :  { %1856 = vmatprep.subr.bf16.mxu1 %v1893_v7 }
 0x23b   :  { %1858 = vmatpush1.bf16.msra.mxu1 %v1857_v5 }
 0x23c   :  { %1859 = vmatprep.subr.bf16.mxu1 %v1893_v7 }
 0x23f   :  { %1861 = vmatpush1.bf16.msra.mxu1 %v1860_v9 }
 0x240   :  { %1862 = vmatprep.subr.bf16.mxu1 %v1893_v7 }
 0x243   :  { %1864 = vmatpush1.bf16.msra.mxu1 %v1863_v14 }
 0x244   :  { %1865 = vmatprep.subr.bf16.mxu1 %v1893_v7 }
 0x247   :  { %1867 = vmatpush1.bf16.msra.mxu1 %v1866_v17 }
 0x248   :  { %1868 = vmatprep.subr.bf16.mxu1 %v1893_v7 }
 0x24b   :  { %1870 = vmatpush1.bf16.msra.mxu1 %v1869_v20 }
 0x24c   :  { %1871 = vmatprep.subr.bf16.mxu1 %v1893_v7  ;;  %v1123_v7 = vld [vmem:[%s2788_s7 + $0x10] sm:$0xff] }
 0x24f   :  { %1873 = vmatpush1.bf16.msra.mxu1 %v1872_v23 }
 0x252   :  { %1093 = vmatmul.mubr.f32.vlgmr.msra.gmra.mrb[14].mxu1 %v2502_v57  ;;  %v1124_v57 = vld [vmem:[%s2788_s7 + $0x18] sm:$0xff] }
 0x253   :  { %1436 = vmatprep.mubr.msk.f32.mxu1 %vm641_vm3, %v2517_v61  ;;  %v1878_v61 = vpack.c.bf16 %v1124_v57, %v1123_v7 }
 0x255   :  { %1879 = vmatprep.subr.bf16.mxu0 %v1878_v61 }
 0x256   :  { %1098 = vmatmul.mubr.f32.gmra.mrb[16].mxu1 %v2524_v1  ;;  %1881 = vmatpush3.bf16.msra.mxu0 %v1878_v61  ;;  %v1125_v1 = vld [vmem:[%s2788_s7 + $0x20] sm:$0xff]  ;;  %v1226_v61 = vand.u32 127, %v144_v10 }
 0x257   :  { %v1882_v28 = vpack.c.bf16 %v1126_v27, %v1125_v1 }
 0x259   :  { %1883 = vmatprep.subr.bf16.mxu0 %v1882_v28 }
 0x25a   :  { %1885 = vmatpush3.bf16.msra.mxu0 %v1882_v28 }
 0x25b   :  { %1887 = vmatprep.subr.bf16.mxu0 %v1886_v31 }
 0x25e   :  { %1889 = vmatpush3.bf16.msra.mxu0 %v1886_v31 }
 0x2d4   :  { %v714_v32 = vpop.f32.mrb[6].mxu1  ;;  %v793_v33 = vpop.f32.mrb[10].mxu0 }
 0x2d5   :  { %v716_v34 = vpop.f32.mrb[7].mxu1  ;;  %v795_v35 = vpop.f32.mrb[11].mxu0  ;;  %v723_v38 = vrot.slane %v714_v32, 1 }
 0x2d8   :  { %v719_v36 = vpop.f32.mrb[8].mxu1  ;;  %v798_v37 = vpop.f32.mrb[12].mxu0 }
 0x2d9   :  { %v724_v39 = vrot.slane %v719_v36, 1  ;;  %v721_v40 = vpop.f32.mrb[9].mxu1  ;;  %v800_v41 = vpop.f32.mrb[13].mxu0 }
 0x2db   :  { %v725_v42 = vsel %vm146_vm0, %v723_v38, %v724_v39  ;;  %v726_v43 = vsel %vm146_vm0, %v724_v39, %v723_v38 }
 0x2dc   :  { %v794_v44 = vadd.f32 %v793_v33, %v725_v42  ;;  %v799_v45 = vadd.f32 %v798_v37, %v726_v43 }
 0x2fc   :  { %v889_v46 = vpop.f32.mrb[10].mxu1  ;;  %v991_v47 = vpop.f32.mrb[14].mxu0 }
 0x2fd   :  { %v891_v48 = vpop.f32.mrb[11].mxu1  ;;  %v993_v49 = vpop.f32.mrb[15].mxu0  ;;  %v898_v53 = vrot.slane %v889_v46, 2  ;;  %v1000_v54 = vrot.slane %v991_v47, 3 }
 0x300   :  { %v894_v50 = vpop.f32.mrb[12].mxu1  ;;  %v996_v51 = vpop.f32.mrb[16].mxu0 }
 0x301   :  { %v899_v55 = vrot.slane %v894_v50, 2  ;;  %v1001_v56 = vrot.slane %v996_v51, 3  ;;  %v896_v58 = vpop.f32.mrb[13].mxu1  ;;  %v998_v59 = vpop.f32.mrb[17].mxu0 }
 0x303   :  { %v900_v60 = vsel %vm571_vm2, %v898_v53, %v899_v55  ;;  %v901_v62 = vsel %vm571_vm2, %v899_v55, %v898_v53  ;;  %v1003_v63 = vsel %vm1002_vm4, %v1000_v54, %v1001_v56  ;;  %v1004_v0 = vsel %vm1002_vm4, %v1001_v56, %v1000_v54 }
 0x304   :  { %v902_v2 = vadd.f32 %v900_v60, %v794_v44  ;;  %v903_v3 = vadd.f32 %v901_v62, %v799_v45 }
 0x306   :  { %v1005_v52 = vadd.f32 %v1003_v63, %v902_v2  ;;  %v1006_v4 = vadd.f32 %v1004_v0, %v903_v3 }
 0x325   :  { %v1094_v5 = vpop.f32.mrb[14].mxu1 }
 0x326   :  { %v1096_v6 = vpop.f32.mrb[15].mxu1  ;;  %v1103_v9 = vrot.slane %v1094_v5, 4 }
 0x329   :  { %v1099_v8 = vpop.f32.mrb[16].mxu1 }
 0x32a   :  { %v1104_v12 = vrot.slane %v1099_v8, 4  ;;  %v1101_v13 = vpop.f32.mrb[17].mxu1 }
 0x32c   :  { %v1106_v14 = vsel %vm1105_vm5, %v1103_v9, %v1104_v12  ;;  %v1107_v15 = vsel %vm1105_vm5, %v1104_v12, %v1103_v9 }
 0x32d   :  { %v1108_v17 = vadd.f32 %v1106_v14, %v1005_v52  ;;  %v1109_v18 = vadd.f32 %v1107_v15, %v1006_v4 }
 0x32f   :  { %v1118_v19 = vadd.f32 %v1437_v16, %v1109_v18  ;;  %v1117_v20 = vadd.f32 %v1437_v16, %v1108_v17 }
 0x331   :  { %v1120_v21 = vmax.f32 %v1118_v19, 0.0  ;;  %v1119_v22 = vmax.f32 %v1117_v20, 0.0 }
 0x333   :  { %1573 = vmatprep.mubr.msk.f32.mxu0 %vm1136_vm6, %v1119_v22 }
 0x334   :  { %1574 = vmatmul.mubr.msk.f32.vlgmr.msra.gmra.mrb[18].mxu0 %vm1136_vm6, %v1120_v21 }
 0x407   :  { %v1575_v23 = vpop.f32.mrb[18].mxu0 }
 0x408   :  { %v1209_v24 = vpop.f32.mrb[19].mxu0  ;;  %v1215_v26 = vadd.f32 %v1575_v23, %v1438_v11 }
 0x409   :  { %v1210_v25 = vadd.f32 %v1438_v11, %v1209_v24 }
 0x40a   :  { %v1222_v57 = vsel %vm1218_vm7, %v1215_v26, -inf }
 0x40b   :  { %v1219_v7 = vsel %vm1218_vm7, %v1210_v25, -inf }
 0x40c   :  { %1220 = vmax.xlane.f32.xlu0 %v1219_v7 }
 0x410   :  { %1223 = vmax.xlane.f32.xlu0 %v1222_v57 }
 0x499   :  { %v1221_v1 = vpop.xlane.xlu0 %1220 }
 0x49a   :  { %vm1227_vm8 = vcmp.eq.f32.partialorder %v1210_v25, %v1221_v1 }
 0x49b   :  { %v1229_v27 = vsel %vm1227_vm8, %v1226_v61, 6 }
 0x49c   :  { %v1231_v28 = vsel %vm1218_vm7, %v1229_v27, 2147483647 }
 0x49d   :  { %v1224_v29 = vpop.xlane.xlu0 %1223  ;;  %v1233_v30 = vshra.s32 %v1231_v28, 16  ;;  %v1232_v36 = vand.u32 65535, %v1231_v28 }
 0x49e   :  { %vm1228_vm9 = vcmp.eq.f32.partialorder %v1215_v26, %v1224_v29 }
 0x49f   :  { %v1230_v31 = vsel %vm1228_vm9, %v1226_v61, 6  ;;  %v1235_v32 = vcvt.s32.f32 %v1233_v30  ;;  %v1234_v38 = vcvt.s32.f32 %v1232_v36 }
 0x4a0   :  { %v1246_v33 = vsel %vm1218_vm7, %v1230_v31, 2147483647 }
 0x4a1   :  { %1236 = vmin.xlane.f32.xlu1 %v1235_v32  ;;  %v1248_v34 = vshra.s32 %v1246_v33, 16  ;;  %v1247_v10 = vand.u32 65535, %v1246_v33 }
 0x4a3   :  { %v1250_v35 = vcvt.s32.f32 %v1248_v34  ;;  %v1249_v41 = vcvt.s32.f32 %v1247_v10 }
 0x4a5   :  { %1251 = vmin.xlane.f32.xlu1 %v1250_v35 }
 0x52e   :  { %v1237_v37 = vpop.xlane.xlu1 %1236 }
 0x52f   :  { %vm1238_vm10 = vcmp.eq.f32.partialorder %v1235_v32, %v1237_v37  ;;  %v1243_v43 = vcvt.f32.s32 %v1237_v37 }
 0x530   :  { %v1239_v39 = vsel %vm1238_vm10, %v1234_v38, inf }
 0x531   :  { %1240 = vmin.xlane.f32.xlu0 %v1239_v39  ;;  %v1244_v45 = vshll.u32 %v1243_v43, 16 }
 0x532   :  { %v1252_v40 = vpop.xlane.xlu1 %1251 }
 0x533   :  { %vm1253_vm11 = vcmp.eq.f32.partialorder %v1250_v35, %v1252_v40  ;;  %v1258_v46 = vcvt.f32.s32 %v1252_v40 }
 0x534   :  { %v1254_v42 = vsel %vm1253_vm11, %v1249_v41, inf }
 0x535   :  { %1255 = vmin.xlane.f32.xlu1 %v1254_v42  ;;  %v1259_v50 = vshll.u32 %v1258_v46, 16 }
 0x5be   :  { %v1241_v44 = vpop.xlane.xlu0 %1240 }
 0x5bf   :  { %v1242_v47 = vcvt.f32.s32 %v1241_v44 }
 0x5c1   :  { %v1245_v48 = vadd.s32 %v1244_v45, %v1242_v47 }
 0x5c2   :  { %v1256_v49 = vpop.xlane.xlu1 %1255 }
 0x5c3   :  { %1262 = vst.msk [vmem:[%s2791_s9] sm:$0xff] %vm1261_vm12, %v1245_v48  ;;  %v1257_v51 = vcvt.f32.s32 %v1256_v49 }
 0x5c5   :  { %v1260_v53 = vadd.s32 %v1259_v50, %v1257_v51 }
 0x5c7   :  { %1263 = vst.msk [vmem:[%s2791_s9 + $0x8] sm:$0xff] %vm1261_vm12, %v1260_v53 }

</bundles_post_ra>
